<compile_context>
chip_gen: v7x
topology: tpu7x:2x2x1
jax: 0.10.0
libtpu: 0.0.40
codegen_flags: <defaults>
</compile_context>

<pallas_src>
import jax
import jax.numpy as jnp
from jax.experimental import pallas as pl
from jax.experimental.pallas import tpu as pltpu

H1, H2 = 400, 300          # logical hidden sizes (torch module)
H1P, H2P = 512, 384        # lane-padded hidden sizes used on-chip


def _round_up(x, m):
    return (x + m - 1) // m * m


def r_hat_kernel(x_ref, w1_ref, b1_ref, w2_ref, b2_ref, w3_ref, b3_ref, o_ref):
    # Layer 1: single packed-K matmul (bf16 MXU, f32 accumulation); bias/ReLU
    # in f32 (v5e VPU has no bf16).
    h1 = jnp.dot(x_ref[...], w1_ref[...],
                 preferred_element_type=jnp.float32) + b1_ref[...]
    h1 = jnp.maximum(h1, 0.0).astype(jnp.bfloat16)

    # Layer 2: the dominant 512x384 (padded 400x300) matmul.
    h2 = jnp.dot(h1, w2_ref[...],
                 preferred_element_type=jnp.float32) + b2_ref[...]
    h2 = jnp.maximum(h2, 0.0)

    # Layer 3 (384 -> 1): N=1 wastes MXU columns, so VPU multiply + XLU lane
    # reduce in f32 — both units are otherwise idle under the matmuls.
    r = jnp.sum(h2 * w3_ref[...], axis=-1, keepdims=True) + b3_ref[...]
    o_ref[...] = r.astype(o_ref.dtype)


def compute_r_hat(state, action, params, *, block_b=2048):
    """state: (B, state_dim), action: (B, action_dim) -> r_hat: (B, 1) f32."""
    w1, b1, w2, b2, w3, b3 = params
    B, S = state.shape
    A = action.shape[1]
    din = S + A
    din_pad = w1.shape[0]
    assert din_pad == _round_up(max(din, 1), 128), (din, din_pad)

    # Batch tile: multiple of 128 sublanes.  Cap so the grid keeps >= 2 steps
    # whenever B allows it (megacore sharding on v7x needs >= 2 tiles); at
    # TB=2048 the per-tile VMEM footprint (~12 MB incl. f32 h1/h2 temporaries)
    # stays well under the explicit 48 MiB limit on every generation.
    TB = min(block_b, _round_up(pl.cdiv(B, 2), 128))
    B_pad = _round_up(B, TB)

    # Pack cat([state, action]) into one zero-padded lane-dense bf16 slab so
    # layer 1 is a single K=din_pad matmul and one contiguous DMA per tile.
    x = jnp.concatenate([state, action], axis=1).astype(jnp.bfloat16)
    x = jnp.pad(x, ((0, B_pad - B), (0, din_pad - din)))

    flops = 2 * B_pad * (din_pad * H1P + H1P * H2P + H2P)
    bytes_accessed = (
        B_pad * din_pad * 2 + B_pad * 4          # bf16 activations in, f32 out
        + (din_pad * H1P + H1P * H2P) * 2        # bf16 weights
        + (H1P + 2 * H2P + 1) * 4                # f32 biases + w3 row
    )

    def const_spec(shape):
        return pl.BlockSpec(shape, lambda i: (0, 0))

    out = pl.pallas_call(
        r_hat_kernel,
        out_shape=jax.ShapeDtypeStruct((B_pad, 1), jnp.float32),
        grid=(B_pad // TB,),
        in_specs=[
            pl.BlockSpec((TB, din_pad), lambda i: (i, 0)),  # packed state|action
            const_spec((din_pad, H1P)),   # w1  VMEM-resident across grid steps
            const_spec((1, H1P)),         # b1
            const_spec((H1P, H2P)),       # w2
            const_spec((1, H2P)),         # b2
            const_spec((1, H2P)),         # w3 as a row (torch l3.weight layout)
            const_spec((1, 1)),           # b3
        ],
        out_specs=pl.BlockSpec((TB, 1), lambda i: (i, 0)),
        compiler_params=pltpu.CompilerParams(
            dimension_semantics=("parallel",),      # megacore sharding on v7x
            vmem_limit_bytes=48 * 1024 * 1024),     # big tiles fit on v5e too
        cost_estimate=pl.CostEstimate(
            flops=flops, transcendentals=0, bytes_accessed=bytes_accessed),
    )(x, w1, b1, w2, b2, w3, b3)
    return out[:B]


def init_params(key, state_dim, action_dim):
    """Deterministic init mimicking nn.Linear's U(-1/sqrt(fan_in), 1/sqrt(fan_in)).

    Matmul weights are stored pre-transposed (in, out), zero-padded so every
    lane dimension is a multiple of 128 (din->128k, 400->512, 300->384), and
    cast to bf16 (MXU fast path).  Biases and the layer-3 row stay f32 (VPU
    path).  Zero padding is exact: padded rows/cols contribute 0 and relu(0)=0.
    """
    din = state_dim + action_dim
    din_pad = _round_up(max(din, 1), 128)
    key, k1w, k1b, k2w, k2b, k3w, k3b = jax.random.split(key, 7)

    def uinit(k, shape, fan_in):
        bound = 1.0 / (float(fan_in) ** 0.5)
        return jax.random.uniform(k, shape, jnp.float32, -bound, bound)

    w1 = uinit(k1w, (din, H1), din)
    b1 = uinit(k1b, (1, H1), din)
    w2 = uinit(k2w, (H1, H2), H1)
    b2 = uinit(k2b, (1, H2), H1)
    w3 = uinit(k3w, (1, H2), H2)   # l3.weight is (1, 300) in torch — used as a row
    b3 = uinit(k3b, (1, 1), H2)

    w1 = jnp.pad(w1, ((0, din_pad - din), (0, H1P - H1))).astype(jnp.bfloat16)
    b1 = jnp.pad(b1, ((0, 0), (0, H1P - H1)))
    w2 = jnp.pad(w2, ((0, H1P - H1), (0, H2P - H2))).astype(jnp.bfloat16)
    b2 = jnp.pad(b2, ((0, 0), (0, H2P - H2)))
    w3 = jnp.pad(w3, ((0, 0), (0, H2P - H2)))
    return (w1, b1, w2, b2, w3, b3)


def reference_r_hat(state, action, params):
    """Pure-JAX reference with the identical bf16/f32 mixed-precision recipe."""
    w1, b1, w2, b2, w3, b3 = params
    din = state.shape[1] + action.shape[1]
    x = jnp.concatenate([state, action], axis=1).astype(jnp.bfloat16)
    x = jnp.pad(x, ((0, 0), (0, w1.shape[0] - din)))
    h1 = jnp.dot(x, w1, preferred_element_type=jnp.float32) + b1
    h1 = jnp.maximum(h1, 0.0).astype(jnp.bfloat16)
    h2 = jnp.maximum(jnp.dot(h1, w2, preferred_element_type=jnp.float32) + b2, 0.0)
    return jnp.sum(h2 * w3, axis=-1, keepdims=True) + b3


if __name__ == "__main__":
    B, STATE_DIM, ACTION_DIM = 4, 16, 4

    key = jax.random.PRNGKey(0)
    key, ks, ka, kp = jax.random.split(key, 4)
    state = jax.random.normal(ks, (B, STATE_DIM), jnp.float32)
    action = jax.random.normal(ka, (B, ACTION_DIM), jnp.float32)
    params = init_params(kp, STATE_DIM, ACTION_DIM)

    r_hat = compute_r_hat(state, action, params)
    r_hat = jax.block_until_ready(r_hat)

    ref = reference_r_hat(state, action, params)
    assert r_hat.shape == (B, 1), r_hat.shape
    assert jnp.allclose(r_hat, ref, atol=5e-3, rtol=5e-3), (r_hat, ref)
    print("KERNEL_OK")
</pallas_src>

<mosaic_0001>
module attributes {stable_mosaic.version = 11 : i64} {
  func.func @r_hat_kernel(%arg0: i32, %arg1: memref<128x128xbf16, #tpu.memory_space<vmem>>, %arg2: memref<128x512xbf16, #tpu.memory_space<vmem>>, %arg3: memref<1x512xf32, #tpu.memory_space<vmem>>, %arg4: memref<512x384xbf16, #tpu.memory_space<vmem>>, %arg5: memref<1x384xf32, #tpu.memory_space<vmem>>, %arg6: memref<1x384xf32, #tpu.memory_space<vmem>>, %arg7: memref<1x1xf32, #tpu.memory_space<vmem>>, %arg8: memref<128x1xf32, #tpu.memory_space<vmem>>) attributes {dimension_semantics = [#tpu.dimension_semantics<parallel>], iteration_bounds = array<i64: 1>, scalar_prefetch = 0 : i64, scratch_operands = 0 : i64, tpu.core_type = #tpu.core_type<tc>, window_params = [{transform_indices = @transform_0, window_bounds = array<i64: 128, 128>}, {pipeline_mode = #tpu.pipeline_mode<synchronous>, transform_indices = @transform_1, window_bounds = array<i64: 128, 512>}, {pipeline_mode = #tpu.pipeline_mode<synchronous>, transform_indices = @transform_2, window_bounds = array<i64: 1, 512>}, {pipeline_mode = #tpu.pipeline_mode<synchronous>, transform_indices = @transform_3, window_bounds = array<i64: 512, 384>}, {pipeline_mode = #tpu.pipeline_mode<synchronous>, transform_indices = @transform_4, window_bounds = array<i64: 1, 384>}, {pipeline_mode = #tpu.pipeline_mode<synchronous>, transform_indices = @transform_5, window_bounds = array<i64: 1, 384>}, {pipeline_mode = #tpu.pipeline_mode<synchronous>, transform_indices = @transform_6, window_bounds = array<i64: 1, 1>}, {transform_indices = @transform_7, window_bounds = array<i64: 128, 1>}]} {
    %c0 = arith.constant 0 : index
    %c0_0 = arith.constant 0 : index
    %0 = vector.load %arg1[%c0, %c0_0] : memref<128x128xbf16, #tpu.memory_space<vmem>>, vector<128x128xbf16>
    %c0_1 = arith.constant 0 : index
    %c0_2 = arith.constant 0 : index
    %1 = vector.load %arg2[%c0_1, %c0_2] : memref<128x512xbf16, #tpu.memory_space<vmem>>, vector<128x512xbf16>
    %cst = arith.constant dense<0.000000e+00> : vector<128x512xf32>
    %2 = tpu.matmul %0, %1, %cst {dimension_numbers = #tpu.dot_dimension_numbers<[1], [0], [0], [1], [0, 0, 1, 1], [], []>} : vector<128x128xbf16>, vector<128x512xbf16>, vector<128x512xf32> -> vector<128x512xf32>
    %c0_3 = arith.constant 0 : index
    %c0_4 = arith.constant 0 : index
    %3 = vector.load %arg3[%c0_3, %c0_4] : memref<1x512xf32, #tpu.memory_space<vmem>>, vector<1x512xf32>
    %4 = vector.broadcast %3 : vector<1x512xf32> to vector<128x512xf32>
    %5 = arith.addf %2, %4 : vector<128x512xf32>
    %cst_5 = arith.constant 0.000000e+00 : f32
    %6 = vector.broadcast %cst_5 : f32 to vector<128x512xf32>
    %7 = arith.maximumf %5, %6 : vector<128x512xf32>
    %8 = arith.truncf %7 : vector<128x512xf32> to vector<128x512xbf16>
    %c0_6 = arith.constant 0 : index
    %c0_7 = arith.constant 0 : index
    %9 = vector.load %arg4[%c0_6, %c0_7] : memref<512x384xbf16, #tpu.memory_space<vmem>>, vector<512x384xbf16>
    %cst_8 = arith.constant dense<0.000000e+00> : vector<128x384xf32>
    %10 = tpu.matmul %8, %9, %cst_8 {dimension_numbers = #tpu.dot_dimension_numbers<[1], [0], [0], [1], [0, 0, 1, 1], [], []>} : vector<128x512xbf16>, vector<512x384xbf16>, vector<128x384xf32> -> vector<128x384xf32>
    %c0_9 = arith.constant 0 : index
    %c0_10 = arith.constant 0 : index
    %11 = vector.load %arg5[%c0_9, %c0_10] : memref<1x384xf32, #tpu.memory_space<vmem>>, vector<1x384xf32>
    %12 = vector.broadcast %11 : vector<1x384xf32> to vector<128x384xf32>
    %13 = arith.addf %10, %12 : vector<128x384xf32>
    %cst_11 = arith.constant 0.000000e+00 : f32
    %14 = vector.broadcast %cst_11 : f32 to vector<128x384xf32>
    %15 = arith.maximumf %13, %14 : vector<128x384xf32>
    %c0_12 = arith.constant 0 : index
    %c0_13 = arith.constant 0 : index
    %16 = vector.load %arg6[%c0_12, %c0_13] : memref<1x384xf32, #tpu.memory_space<vmem>>, vector<1x384xf32>
    %17 = vector.broadcast %16 : vector<1x384xf32> to vector<128x384xf32>
    %18 = arith.mulf %15, %17 : vector<128x384xf32>
    %cst_14 = arith.constant dense<0.000000e+00> : vector<128xf32>
    %19 = vector.multi_reduction <add>, %18, %cst_14 [1] : vector<128x384xf32> to vector<128xf32>
    %20 = vector.shape_cast %19 : vector<128xf32> to vector<128x1xf32>
    %c0_15 = arith.constant 0 : index
    %c0_16 = arith.constant 0 : index
    %21 = vector.load %arg7[%c0_15, %c0_16] : memref<1x1xf32, #tpu.memory_space<vmem>>, vector<1x1xf32>
    %22 = vector.broadcast %21 : vector<1x1xf32> to vector<128x1xf32>
    %23 = arith.addf %20, %22 : vector<128x1xf32>
    %c0_17 = arith.constant 0 : index
    %c0_18 = arith.constant 0 : index
    %24 = vector.load %arg8[%c0_17, %c0_18] : memref<128x1xf32, #tpu.memory_space<vmem>>, vector<128x1xf32>
    tpu.vector_store %arg8[%c0_17, %c0_18], %23 {strides = array<i32>} : memref<128x1xf32, #tpu.memory_space<vmem>>, vector<128x1xf32>,
    return
  }
  func.func @transform_0(%arg0: i32) -> (i32, i32) {
    %c0_i32 = arith.constant 0 : i32
    %c0_i32_0 = arith.constant 0 : i32
    return %arg0, %c0_i32 : i32, i32
  }
  func.func @transform_1(%arg0: i32) -> (i32, i32) {
    %c0_i32 = arith.constant 0 : i32
    %c0_i32_0 = arith.constant 0 : i32
    %c0_i32_1 = arith.constant 0 : i32
    return %c0_i32, %c0_i32_0 : i32, i32
  }
  func.func @transform_2(%arg0: i32) -> (i32, i32) {
    %c0_i32 = arith.constant 0 : i32
    %c0_i32_0 = arith.constant 0 : i32
    %c0_i32_1 = arith.constant 0 : i32
    return %c0_i32, %c0_i32_0 : i32, i32
  }
  func.func @transform_3(%arg0: i32) -> (i32, i32) {
    %c0_i32 = arith.constant 0 : i32
    %c0_i32_0 = arith.constant 0 : i32
    %c0_i32_1 = arith.constant 0 : i32
    return %c0_i32, %c0_i32_0 : i32, i32
  }
  func.func @transform_4(%arg0: i32) -> (i32, i32) {
    %c0_i32 = arith.constant 0 : i32
    %c0_i32_0 = arith.constant 0 : i32
    %c0_i32_1 = arith.constant 0 : i32
    return %c0_i32, %c0_i32_0 : i32, i32
  }
  func.func @transform_5(%arg0: i32) -> (i32, i32) {
    %c0_i32 = arith.constant 0 : i32
    %c0_i32_0 = arith.constant 0 : i32
    %c0_i32_1 = arith.constant 0 : i32
    return %c0_i32, %c0_i32_0 : i32, i32
  }
  func.func @transform_6(%arg0: i32) -> (i32, i32) {
    %c0_i32 = arith.constant 0 : i32
    %c0_i32_0 = arith.constant 0 : i32
    %c0_i32_1 = arith.constant 0 : i32
    return %c0_i32, %c0_i32_0 : i32, i32
  }
  func.func @transform_7(%arg0: i32) -> (i32, i32) {
    %c0_i32 = arith.constant 0 : i32
    %c0_i32_0 = arith.constant 0 : i32
    return %arg0, %c0_i32 : i32, i32
  }
}

</mosaic_0001>

<bundles_post_ra>
// kernel: tpu_custom_call.1
= control target key start
LH: loop header
LB: loop body
LE: loop exit
PB: predicated region body
PF: predicated region fallthrough
CT: control target
= control target key end

     0   :  { %s3022_s0 = inlined_call_operand.hbm [shape: bf16[128,128], index: 0, kind: input, shape index: {}]   ;;  %s3023_s1 = inlined_call_operand.hbm [shape: bf16[128,512], index: 1, kind: input, shape index: {}]   ;;  %s3024_s2 = inlined_call_operand.vmem [shape: f32[1,512], index: 2, kind: input, shape index: {}]   ;;  %s3025_s3 = inlined_call_operand.hbm [shape: bf16[512,384], index: 3, kind: input, shape index: {}]   ;;  %s3026_s4 = inlined_call_operand.vmem [shape: f32[1,384], index: 4, kind: input, shape index: {}]   ;;  %s3027_s5 = inlined_call_operand.vmem [shape: f32[1,384], index: 5, kind: input, shape index: {}]   ;;  %s3028_s6 = inlined_call_operand.<no memory space> [shape: f32[1,1], index: 6, kind: input, shape index: {}]   ;;  %s3029_s7 = inlined_call_operand.vmem [shape: f32[128,1], index: 7, kind: output, shape index: {}]  }
   0x1   :  { %v12_v0 = vstv %s3028_s6 }
   0x2   :  { %13 = vst [vmem:[#allocation2] sm:$0x1] %v12_v0 }
   0x3   :  { %14 = vsyncpa [#allocation4], 0 }
   0x4   :  { %15 = vsyncpa [#allocation6], 0  ;;  %s2563_s26 = smov [#allocation5]   ;;  %s2493_s30 = scalar_lea.hbm %s3023_s1, 4096 }
   0x5   :  { %s33_s27 = sshll.u32 %s2563_s26, 4  ;;  %p2494_p0 = scmp.ne.s32.totalorder %s3023_s1, %s2493_s30  ;;  %s34_s27 = int_to_ptr.vmem [resolvable:$true] %s33_s27 }
   0x6   :  { %p2497_p1 = scmp.lt.u32.totalorder %s2493_s30, %s3023_s1 }
   0x8   :  { %p2499_p2 = pnand %p2497_p1, %p2494_p0 }
   0xa   :  { %2502 = shalt.err (!%p2499_p2)
}
   0xb   :  { %s2503_s6 = scalar_lea.vmem %s34_s27, 4096  ;;  %p2508_p4 = scmp.lt.s32.totalorder %s34_s27, %s34_s27 }
   0xc   :  { %p2504_p3 = scmp.ne.s32.totalorder %s34_s27, %s2503_s6  ;;  %p2509_p5 = scmp.lt.s32.totalorder %s2503_s6, %s2503_s6 }
   0xe   :  { %p2510_p6 = por %p2509_p5, %p2508_p4 }
  0x10   :  { %p2511_p7 = pnand %p2510_p6, %p2504_p3 }
  0x12   :  { %2514 = shalt.err (!%p2511_p7)
}
  0x13   :  { %s2564_s12 = smov 256   ;;  %s2565_s13 = smov 16  }
  0x14   :  { %39 = dma.hbm_to_vmem [thread:$0]  %s3023_s1, 4096, %s34_s27, [#allocation6], %s2564_s12, %s2564_s12, %s2565_s13  }
  0x15   :  { %s2566_s16 = smov [#allocation3]   ;;  %s2515_s20 = scalar_lea.hbm %s3022_s0, 1024 }
  0x16   :  { %s21_s17 = sshll.u32 %s2566_s16, 4  ;;  %p2516_p8 = scmp.ne.s32.totalorder %s3022_s0, %s2515_s20  ;;  %s22_s17 = int_to_ptr.vmem [resolvable:$true] %s21_s17 }
  0x17   :  { %p2519_p9 = scmp.lt.u32.totalorder %s2515_s20, %s3022_s0 }
  0x19   :  { %p2521_p10 = pnand %p2519_p9, %p2516_p8 }
  0x1b   :  { %2524 = shalt.err (!%p2521_p10)
}
  0x1c   :  { %s2525_s25 = scalar_lea.vmem %s22_s17, 1024  ;;  %p2530_p12 = scmp.lt.s32.totalorder %s22_s17, %s22_s17 }
  0x1d   :  { %p2526_p11 = scmp.ne.s32.totalorder %s22_s17, %s2525_s25  ;;  %p2531_p13 = scmp.lt.s32.totalorder %s2525_s25, %s2525_s25 }
  0x1f   :  { %p2532_p0 = por %p2531_p13, %p2530_p12 }
  0x21   :  { %p2533_p1 = pnand %p2532_p0, %p2526_p11 }
  0x23   :  { %2536 = shalt.err (!%p2533_p1)
}
  0x24   :  { %s2567_s1 = smov 64   ;;  %s2568_s26 = smov 4  }
  0x25   :  { %27 = dma.hbm_to_vmem [thread:$0]  %s3022_s0, 1024, %s22_s17, [#allocation4], %s2567_s1, %s2567_s1, %s2568_s26  }
  0x26   :  { %s2569_s29 = smov [#allocation7]   ;;  %s2537_s10 = scalar_lea.hbm %s3025_s3, 12288 }
  0x27   :  { %s47_s30 = sshll.u32 %s2569_s29, 4  ;;  %p2538_p2 = scmp.ne.s32.totalorder %s3025_s3, %s2537_s10  ;;  %s48_s30 = int_to_ptr.vmem [resolvable:$true] %s47_s30 }
  0x28   :  { %p2541_p3 = scmp.lt.u32.totalorder %s2537_s10, %s3025_s3 }
  0x2a   :  { %p2543_p4 = pnand %p2541_p3, %p2538_p2 }
  0x2c   :  { %2546 = shalt.err (!%p2543_p4)
}
  0x2d   :  { %s2547_s14 = scalar_lea.vmem %s48_s30, 12288  ;;  %p2552_p6 = scmp.lt.s32.totalorder %s48_s30, %s48_s30 }
  0x2e   :  { %p2548_p5 = scmp.ne.s32.totalorder %s48_s30, %s2547_s14  ;;  %p2553_p7 = scmp.lt.s32.totalorder %s2547_s14, %s2547_s14 }
  0x30   :  { %p2554_p8 = por %p2553_p7, %p2552_p6 }
  0x32   :  { %p2555_p9 = pnand %p2554_p8, %p2548_p5 }
  0x34   :  { %2558 = shalt.err (!%p2555_p9)
}
  0x35   :  { %s2570_s0 = smov 192   ;;  %s2571_s15 = smov 12  }
  0x36   :  { %53 = dma.hbm_to_vmem [thread:$0]  %s3025_s3, 12288, %s48_s30, [#allocation6], %s2570_s0, %s2570_s0, %s2571_s15  }
  0x37   :  { %2559 = dma.done.wait [#allocation4], 1024  }
  0x38   :  { %2560 = vsyncadd [#allocation4], 4294966272 }
  0x39   :  { %2561 = dma.done.wait [#allocation6], 16384  }
  0x3a   :  { %2562 = vsyncadd [#allocation6], 4294950912  ;;  %v2572_v1 = vmov 0   ;;  %v2309_v2 = vld [vmem:[#allocation5 + $0x4] ss:$16 sps:$4 sm:$0xff]   ;;  %v2334_v37 = vld [vmem:[#allocation3 + $0x8] sm:$0xff]  }
  0x3b   :  { %380 = vmatprep.mubr.bf16.mxu0 %v2572_v1  ;;  %493 = vmatprep.mubr.bf16.mxu1 %v2572_v1  ;;  %v2311_v3 = vld [vmem:[#allocation5] ss:$16 sps:$4 sm:$0xff]   ;;  %v2312_v4 = vld [vmem:[#allocation5 + $0x24] ss:$16 sps:$4 sm:$0xff]   ;;  %v2337_v12 = vld [vmem:[#allocation5 + $0xc] ss:$16 sps:$4 sm:$0xff]  }
  0x3c   :  { %348 = vmatprep.subr.bf16.mxu0 %v2309_v2  ;;  %v2314_v5 = vld [vmem:[#allocation5 + $0x20] ss:$16 sps:$4 sm:$0xff]   ;;  %v2315_v6 = vld [vmem:[#allocation5 + $0x44] ss:$16 sps:$4 sm:$0xff]   ;;  %v2339_v13 = vld [vmem:[#allocation5 + $0x8] ss:$16 sps:$4 sm:$0xff]   ;;  %461 = vmatprep.subr.bf16.mxu1 %v2337_v12 }
  0x3d   :  { %349 = vmatpush1.bf16.msra.mxu0 %v2311_v3  ;;  %v2317_v7 = vld [vmem:[#allocation5 + $0x40] ss:$16 sps:$4 sm:$0xff]   ;;  %v2318_v8 = vld [vmem:[#allocation5 + $0x64] ss:$16 sps:$4 sm:$0xff]   ;;  %v2341_v15 = vld [vmem:[#allocation5 + $0x2c] ss:$16 sps:$4 sm:$0xff]   ;;  %462 = vmatpush1.bf16.msra.mxu1 %v2339_v13 }
  0x3e   :  { %350 = vmatprep.subr.bf16.mxu0 %v2312_v4  ;;  %v2320_v9 = vld [vmem:[#allocation5 + $0x60] ss:$16 sps:$4 sm:$0xff]   ;;  %v2321_v10 = vld [vmem:[#allocation5 + $0x84] ss:$16 sps:$4 sm:$0xff]   ;;  %v2343_v16 = vld [vmem:[#allocation5 + $0x28] ss:$16 sps:$4 sm:$0xff]   ;;  %463 = vmatprep.subr.bf16.mxu1 %v2341_v15 }
  0x3f   :  { %v2323_v11 = vld [vmem:[#allocation5 + $0x80] ss:$16 sps:$4 sm:$0xff]   ;;  %v2324_v14 = vld [vmem:[#allocation5 + $0xa4] ss:$16 sps:$4 sm:$0xff]   ;;  %v2344_v18 = vld [vmem:[#allocation5 + $0x4c] ss:$16 sps:$4 sm:$0xff]  }
  0x40   :  { %v2326_v17 = vld [vmem:[#allocation5 + $0xa0] ss:$16 sps:$4 sm:$0xff]   ;;  %v2327_v19 = vld [vmem:[#allocation5 + $0xc4] ss:$16 sps:$4 sm:$0xff]   ;;  %v2346_v21 = vld [vmem:[#allocation5 + $0x48] ss:$16 sps:$4 sm:$0xff]  }
  0x41   :  { %351 = vmatpush1.bf16.msra.mxu0 %v2314_v5  ;;  %v2329_v20 = vld [vmem:[#allocation5 + $0xc0] ss:$16 sps:$4 sm:$0xff]   ;;  %464 = vmatpush1.bf16.msra.mxu1 %v2343_v16  ;;  %v2348_v22 = vld [vmem:[#allocation5 + $0x6c] ss:$16 sps:$4 sm:$0xff]   ;;  %v2330_v23 = vld [vmem:[#allocation5 + $0xe4] ss:$16 sps:$4 sm:$0xff]  }
  0x42   :  { %352 = vmatprep.subr.bf16.mxu0 %v2315_v6  ;;  %465 = vmatprep.subr.bf16.mxu1 %v2344_v18  ;;  %v2332_v24 = vld [vmem:[#allocation5 + $0xe0] ss:$16 sps:$4 sm:$0xff]   ;;  %v2350_v25 = vld [vmem:[#allocation5 + $0x68] ss:$16 sps:$4 sm:$0xff]   ;;  %v2351_v26 = vld [vmem:[#allocation5 + $0x8c] ss:$16 sps:$4 sm:$0xff]  }
  0x43   :  { %v2333_v27 = vld [vmem:[#allocation3] sm:$0xff]   ;;  %v2353_v28 = vld [vmem:[#allocation5 + $0x88] ss:$16 sps:$4 sm:$0xff]   ;;  %v2355_v30 = vld [vmem:[#allocation5 + $0xac] ss:$16 sps:$4 sm:$0xff]   ;;  %vm1947_vm0 = vcmask 7168  }
  0x44   :  { %v2367_v29 = vld [vmem:[#allocation7 + $0x4] ss:$12 sps:$4 sm:$0xff]   ;;  %v2365_v31 = vld [vmem:[#allocation7] ss:$12 sps:$4 sm:$0xff]   ;;  %v2372_v32 = vld [vmem:[#allocation7 + $0x1c] ss:$12 sps:$4 sm:$0xff]  }
  0x45   :  { %353 = vmatpush1.bf16.msra.mxu0 %v2317_v7  ;;  %466 = vmatpush1.bf16.msra.mxu1 %v2346_v21  ;;  %v2357_v33 = vld [vmem:[#allocation5 + $0xa8] ss:$16 sps:$4 sm:$0xff]   ;;  %v2358_v34 = vld [vmem:[#allocation5 + $0xcc] ss:$16 sps:$4 sm:$0xff]   ;;  %v2375_v36 = vld [vmem:[#allocation7 + $0x34] ss:$12 sps:$4 sm:$0xff]  }
  0x46   :  { %354 = vmatprep.subr.bf16.mxu0 %v2318_v8  ;;  %467 = vmatprep.subr.bf16.mxu1 %v2348_v22  ;;  %v2370_v35 = vld [vmem:[#allocation7 + $0x18] ss:$12 sps:$4 sm:$0xff]   ;;  %v2362_v39 = vld [vmem:[#allocation5 + $0xec] ss:$16 sps:$4 sm:$0xff]   ;;  %v2368_v43 = vld [vmem:[#allocation7 + $0xc8] ss:$12 sps:$4 sm:$0xff]  }
  0x47   :  { %v2360_v38 = vld [vmem:[#allocation5 + $0xc8] ss:$16 sps:$4 sm:$0xff]   ;;  %v2373_v40 = vld [vmem:[#allocation7 + $0x30] ss:$12 sps:$4 sm:$0xff]   ;;  %v2376_v48 = vld [vmem:[#allocation7 + $0xe0] ss:$12 sps:$4 sm:$0xff]  }
  0x48   :  { %v2380_v41 = vld [vmem:[#allocation7 + $0x4c] ss:$12 sps:$4 sm:$0xff]   ;;  %v2378_v44 = vld [vmem:[#allocation7 + $0x48] ss:$12 sps:$4 sm:$0xff]   ;;  %v2383_v45 = vld [vmem:[#allocation7 + $0x64] ss:$12 sps:$4 sm:$0xff]  }
  0x49   :  { %355 = vmatpush1.bf16.msra.mxu0 %v2320_v9  ;;  %468 = vmatpush1.bf16.msra.mxu1 %v2350_v25  ;;  %v2364_v42 = vld [vmem:[#allocation5 + $0xe8] ss:$16 sps:$4 sm:$0xff]   ;;  %v2335_v46 = vld [vmem:[#allocation3 + $0x10] sm:$0xff]   ;;  %v2381_v49 = vld [vmem:[#allocation7 + $0x60] ss:$12 sps:$4 sm:$0xff]  }
  0x4a   :  { %356 = vmatprep.subr.bf16.mxu0 %v2321_v10  ;;  %469 = vmatprep.subr.bf16.mxu1 %v2351_v26  ;;  %v2369_v47 = vld [vmem:[#allocation7 + $0x8] ss:$12 sps:$4 sm:$0xff]   ;;  %v2377_v51 = vld [vmem:[#allocation7 + $0x20] ss:$12 sps:$4 sm:$0xff]   ;;  %v2384_v52 = vld [vmem:[#allocation7 + $0xf8] ss:$12 sps:$4 sm:$0xff]  }
  0x4b   :  { %v2388_v50 = vld [vmem:[#allocation7 + $0x7c] ss:$12 sps:$4 sm:$0xff]   ;;  %v2386_v53 = vld [vmem:[#allocation7 + $0x78] ss:$12 sps:$4 sm:$0xff]   ;;  %v2391_v55 = vld [vmem:[#allocation7 + $0x94] ss:$12 sps:$4 sm:$0xff]  }
  0x4c   :  { %v2336_v54 = vld [vmem:[#allocation3 + $0x18] sm:$0xff]   ;;  %v2394_v61 = vld [vmem:[#allocation7 + $0xa8] ss:$12 sps:$4 sm:$0xff]   ;;  %v2340_v62 = vld [vmem:[#allocation3 + $0x20] sm:$0xff]  }
  0x4d   :  { %357 = vmatpush1.bf16.msra.mxu0 %v2323_v11  ;;  %470 = vmatpush1.bf16.msra.mxu1 %v2353_v28  ;;  %v2385_v56 = vld [vmem:[#allocation7 + $0x38] ss:$12 sps:$4 sm:$0xff]   ;;  %v2389_v57 = vld [vmem:[#allocation7 + $0x90] ss:$12 sps:$4 sm:$0xff]   ;;  %v2400_v63 = vld [vmem:[#allocation7 + $0x128] ss:$12 sps:$4 sm:$0xff]  }
  0x4e   :  { %358 = vmatprep.subr.bf16.mxu0 %v2324_v14  ;;  %471 = vmatprep.subr.bf16.mxu1 %v2355_v30  ;;  %v2392_v58 = vld [vmem:[#allocation7 + $0x110] ss:$12 sps:$4 sm:$0xff]   ;;  %v2396_v59 = vld [vmem:[#allocation7 + $0xac] ss:$12 sps:$4 sm:$0xff]   ;;  %v2401_v2 = vld [vmem:[#allocation7 + $0x68] ss:$12 sps:$4 sm:$0xff]  }
  0x4f   :  { %v2393_v60 = vld [vmem:[#allocation7 + $0x50] ss:$12 sps:$4 sm:$0xff]   ;;  %v2397_v3 = vld [vmem:[#allocation7 + $0xc0] ss:$12 sps:$4 sm:$0xff]   ;;  %v2402_v7 = vld [vmem:[#allocation7 + $0xd8] ss:$12 sps:$4 sm:$0xff]  }
  0x50   :  { %v2399_v0 = vld [vmem:[#allocation7 + $0xc4] ss:$12 sps:$4 sm:$0xff]   ;;  %v2408_v4 = vld [vmem:[#allocation7 + $0x140] ss:$12 sps:$4 sm:$0xff]   ;;  %v2404_v5 = vld [vmem:[#allocation7 + $0xdc] ss:$12 sps:$4 sm:$0xff]  }
  0x51   :  { %359 = vmatpush1.bf16.msra.mxu0 %v2326_v17  ;;  %472 = vmatpush1.bf16.msra.mxu1 %v2357_v33  ;;  %v2409_v6 = vld [vmem:[#allocation7 + $0x80] ss:$12 sps:$4 sm:$0xff]   ;;  %v2416_v8 = vld [vmem:[#allocation7 + $0x158] ss:$12 sps:$4 sm:$0xff]   ;;  %v2405_v12 = vld [vmem:[#allocation7 + $0xf0] ss:$12 sps:$4 sm:$0xff]  }
  0x52   :  { %360 = vmatprep.subr.bf16.mxu0 %v2327_v19  ;;  %473 = vmatprep.subr.bf16.mxu1 %v2358_v34  ;;  %v2407_v9 = vld [vmem:[#allocation7 + $0xf4] ss:$12 sps:$4 sm:$0xff]   ;;  %v2347_v10 = vld [vmem:[#allocation3 + $0x28] sm:$0xff]   ;;  %v2417_v11 = vld [vmem:[#allocation7 + $0x98] ss:$12 sps:$4 sm:$0xff]  }
  0x53   :  { %v2412_v13 = vld [vmem:[#allocation7 + $0x10c] ss:$12 sps:$4 sm:$0xff]   ;;  %v2410_v14 = vld [vmem:[#allocation7 + $0x108] ss:$12 sps:$4 sm:$0xff]   ;;  %v2415_v15 = vld [vmem:[#allocation7 + $0x124] ss:$12 sps:$4 sm:$0xff]  }
  0x54   :  { %v2354_v16 = vld [vmem:[#allocation3 + $0x30] sm:$0xff]   ;;  %v2413_v17 = vld [vmem:[#allocation7 + $0x120] ss:$12 sps:$4 sm:$0xff]   ;;  %v2420_v18 = vld [vmem:[#allocation7 + $0x13c] ss:$12 sps:$4 sm:$0xff]  }
  0x55   :  { %361 = vmatpush1.bf16.msra.mxu0 %v2329_v20  ;;  %474 = vmatpush1.bf16.msra.mxu1 %v2360_v38  ;;  %v2418_v19 = vld [vmem:[#allocation7 + $0x138] ss:$12 sps:$4 sm:$0xff]   ;;  %v2423_v21 = vld [vmem:[#allocation7 + $0x154] ss:$12 sps:$4 sm:$0xff]   ;;  %v2421_v22 = vld [vmem:[#allocation7 + $0x150] ss:$12 sps:$4 sm:$0xff]  }
  0x56   :  { %362 = vmatprep.subr.bf16.mxu0 %v2330_v23  ;;  %475 = vmatprep.subr.bf16.mxu1 %v2362_v39  ;;  %v2361_v20 = vld [vmem:[#allocation3 + $0x38] sm:$0xff]   ;;  %v2426_v26 = vld [vmem:[#allocation7 + $0x168] ss:$12 sps:$4 sm:$0xff]  }
  0x57   :  { %v2424_v23 = vld [vmem:[#allocation7 + $0x170] ss:$12 sps:$4 sm:$0xff]   ;;  %v2432_v28 = vld [vmem:[#allocation7 + $0x248] ss:$12 sps:$4 sm:$0xff]  }
  0x58   :  { %v2425_v25 = vld [vmem:[#allocation7 + $0xb0] ss:$12 sps:$4 sm:$0xff]  }
  0x59   :  { %363 = vmatpush1.bf16.msra.mxu0 %v2332_v24  ;;  %476 = vmatpush1.bf16.msra.mxu1 %v2364_v42  ;;  %v2428_v24 = vld [vmem:[#allocation7 + $0x16c] ss:$12 sps:$4 sm:$0xff]  }
  0x5a   :  { %1327 = vmatprep.subr.bf16.mxu0 %v2367_v29  ;;  %2107 = vmatprep.subr.bf16.mxu1 %v2368_v43  ;;  %v120_v29 = vlaneseq }
  0x5c   :  { %381 = vmatmul.mubr.bf16.vlgmr.msra.gmra.mrb[0].mxu0 %v2333_v27  ;;  %494 = vmatmul.mubr.bf16.vlgmr.msra.gmra.mrb[0].mxu1 %v2333_v27  ;;  %v2431_v27 = vld [vmem:[#allocation7 + $0x184] ss:$12 sps:$4 sm:$0xff]   ;;  %v121_v30 = vshrl.u32 %v120_v29, 7 }
  0x5d   :  { %390 = vmatprep.mubr.bf16.mxu0 %v2572_v1  ;;  %1328 = vmatpush1.bf16.msra.mxu0 %v2365_v31  ;;  %v118_v31 = vld [vmem:[%s3024_s2] sm:$0xf] }
  0x5e   :  { %1329 = vmatprep.subr.bf16.mxu0 %v2372_v32  ;;  %503 = vmatprep.mubr.bf16.mxu1 %v2572_v1  ;;  %v2673_v32 = vsub.s32 1, %v121_v30 }
  0x5f   :  { %2108 = vmatpush3.bf16.msra.mxu1 %v2369_v47 }
  0x60   :  { %2109 = vmatprep.subr.bf16.mxu1 %v2376_v48  ;;  %v2679_v34 = vrot.slane %v118_v31, %v2673_v32 }
  0x61   :  { %1330 = vmatpush1.bf16.msra.mxu0 %v2370_v35 }
  0x62   :  { %1331 = vmatprep.subr.bf16.mxu0 %v2375_v36 }
  0x63   :  { %2110 = vmatpush3.bf16.msra.mxu1 %v2377_v51  ;;  %v2433_v51 = vld [vmem:[#allocation7 + $0x188] ss:$12 sps:$4 sm:$0xff]  }
  0x64   :  { %391 = vmatmul.mubr.bf16.gmra.mrb[4].mxu0 %v2334_v37  ;;  %2111 = vmatprep.subr.bf16.mxu1 %v2384_v52  ;;  %v2685_v52 = vsub.s32 2, %v121_v30 }
  0x65   :  { %400 = vmatprep.mubr.bf16.mxu0 %v2572_v1  ;;  %1332 = vmatpush1.bf16.msra.mxu0 %v2373_v40 }
  0x66   :  { %1333 = vmatprep.subr.bf16.mxu0 %v2380_v41  ;;  %504 = vmatmul.mubr.bf16.gmra.mrb[4].mxu1 %v2334_v37 }
  0x67   :  { %513 = vmatprep.mubr.bf16.mxu1 %v2572_v1  ;;  %2112 = vmatpush3.bf16.msra.mxu1 %v2385_v56  ;;  %v2440_v56 = vld [vmem:[#allocation7 + $0x260] ss:$12 sps:$4 sm:$0xff]  }
  0x68   :  { %2113 = vmatprep.subr.bf16.mxu1 %v2392_v58 }
  0x69   :  { %1334 = vmatpush1.bf16.msra.mxu0 %v2378_v44 }
  0x6a   :  { %1335 = vmatprep.subr.bf16.mxu0 %v2383_v45 }
  0x6b   :  { %2114 = vmatpush3.bf16.msra.mxu1 %v2393_v60 }
  0x6c   :  { %401 = vmatmul.mubr.bf16.gmra.mrb[8].mxu0 %v2335_v46  ;;  %2115 = vmatprep.subr.bf16.mxu1 %v2400_v63  ;;  %v2434_v63 = vld [vmem:[#allocation7 + $0x198] ss:$12 sps:$4 sm:$0xff]  }
  0x6d   :  { %410 = vmatprep.mubr.bf16.mxu0 %v2572_v1  ;;  %1336 = vmatpush1.bf16.msra.mxu0 %v2381_v49 }
  0x6e   :  { %1337 = vmatprep.subr.bf16.mxu0 %v2388_v50  ;;  %514 = vmatmul.mubr.bf16.gmra.mrb[8].mxu1 %v2335_v46  ;;  %v2429_v50 = vld [vmem:[#allocation7 + $0x180] ss:$12 sps:$4 sm:$0xff]  }
  0x6f   :  { %523 = vmatprep.mubr.bf16.mxu1 %v2572_v1  ;;  %2116 = vmatpush3.bf16.msra.mxu1 %v2401_v2  ;;  %v2692_v2 = vrot.slane %v118_v31, %v2685_v52 }
  0x70   :  { %2117 = vmatprep.subr.bf16.mxu1 %v2408_v4 }
  0x71   :  { %1338 = vmatpush1.bf16.msra.mxu0 %v2386_v53 }
  0x72   :  { %1339 = vmatprep.subr.bf16.mxu0 %v2391_v55  ;;  %v2436_v55 = vld [vmem:[#allocation7 + $0x19c] ss:$12 sps:$4 sm:$0xff]  }
  0x73   :  { %2118 = vmatpush3.bf16.msra.mxu1 %v2409_v6  ;;  %v2448_v6 = vld [vmem:[#allocation7 + $0x278] ss:$12 sps:$4 sm:$0xff]  }
  0x74   :  { %411 = vmatmul.mubr.bf16.gmra.mrb[12].mxu0 %v2336_v54  ;;  %2119 = vmatprep.subr.bf16.mxu1 %v2416_v8 }
  0x75   :  { %420 = vmatprep.mubr.bf16.mxu0 %v2572_v1  ;;  %1340 = vmatpush1.bf16.msra.mxu0 %v2389_v57  ;;  %v134_v57 = vsub.s32 3, %v121_v30 }
  0x76   :  { %1341 = vmatprep.subr.bf16.mxu0 %v2396_v59  ;;  %524 = vmatmul.mubr.bf16.gmra.mrb[12].mxu1 %v2336_v54 }
  0x77   :  { %533 = vmatprep.mubr.bf16.mxu1 %v2572_v1  ;;  %2120 = vmatpush3.bf16.msra.mxu1 %v2417_v11 }
  0x78   :  { %2121 = vmatprep.subr.bf16.mxu1 %v2424_v23 }
  0x79   :  { %1342 = vmatpush1.bf16.msra.mxu0 %v2394_v61 }
  0x7a   :  { %1343 = vmatprep.subr.bf16.mxu0 %v2399_v0  ;;  %v2441_v0 = vld [vmem:[#allocation7 + $0x1a0] ss:$12 sps:$4 sm:$0xff]  }
  0x7b   :  { %2122 = vmatpush3.bf16.msra.mxu1 %v2425_v25 }
  0x7c   :  { %421 = vmatmul.mubr.bf16.gmra.mrb[16].mxu0 %v2340_v62  ;;  %2171 = vmatprep.subr.bf16.mxu1 %v2432_v28 }
  0x7d   :  { %430 = vmatprep.mubr.bf16.mxu0 %v2572_v1  ;;  %1344 = vmatpush1.bf16.msra.mxu0 %v2397_v3 }
  0x7e   :  { %1345 = vmatprep.subr.bf16.mxu0 %v2404_v5  ;;  %534 = vmatmul.mubr.bf16.gmra.mrb[16].mxu1 %v2340_v62  ;;  %v2439_v5 = vld [vmem:[#allocation7 + $0x1b4] ss:$12 sps:$4 sm:$0xff]  }
  0x7f   :  { %543 = vmatprep.mubr.bf16.mxu1 %v2572_v1 }
  0x81   :  { %1346 = vmatpush1.bf16.msra.mxu0 %v2402_v7  ;;  %v2694_v7 = vrot.slane %v118_v31, %v134_v57 }
  0x82   :  { %1347 = vmatprep.subr.bf16.mxu0 %v2407_v9 }
  0x84   :  { %431 = vmatmul.mubr.bf16.gmra.mrb[20].mxu0 %v2347_v10 }
  0x85   :  { %440 = vmatprep.mubr.bf16.mxu0 %v2572_v1  ;;  %1348 = vmatpush1.bf16.msra.mxu0 %v2405_v12 }
  0x86   :  { %1349 = vmatprep.subr.bf16.mxu0 %v2412_v13  ;;  %544 = vmatmul.mubr.bf16.gmra.mrb[20].mxu1 %v2347_v10 }
  0x87   :  { %553 = vmatprep.mubr.bf16.mxu1 %v2572_v1 }
  0x89   :  { %1350 = vmatpush1.bf16.msra.mxu0 %v2410_v14  ;;  %v2437_v14 = vld [vmem:[#allocation7 + $0x1b0] ss:$12 sps:$4 sm:$0xff]  }
  0x8a   :  { %1351 = vmatprep.subr.bf16.mxu0 %v2415_v15  ;;  %v2449_v15 = vld [vmem:[#allocation7 + $0x1b8] ss:$12 sps:$4 sm:$0xff]  }
  0x8c   :  { %441 = vmatmul.mubr.bf16.gmra.mrb[24].mxu0 %v2354_v16 }
  0x8d   :  { %450 = vmatprep.mubr.bf16.mxu0 %v2572_v1  ;;  %1352 = vmatpush1.bf16.msra.mxu0 %v2413_v17 }
  0x8e   :  { %1353 = vmatprep.subr.bf16.mxu0 %v2420_v18  ;;  %554 = vmatmul.mubr.bf16.gmra.mrb[24].mxu1 %v2354_v16 }
  0x8f   :  { %563 = vmatprep.mubr.bf16.mxu1 %v2572_v1  ;;  %v2668_v1 = vsub.s32 0, %v121_v30 }
  0x91   :  { %1354 = vmatpush1.bf16.msra.mxu0 %v2418_v19  ;;  %v2676_v33 = vrot.slane %v118_v31, %v2668_v1  ;;  %v2442_v31 = vld [vmem:[#allocation7 + $0x1c8] ss:$12 sps:$4 sm:$0xff]  }
  0x92   :  { %1355 = vmatprep.subr.bf16.mxu0 %v2423_v21  ;;  %v2456_v21 = vld [vmem:[#allocation7 + $0x290] ss:$12 sps:$4 sm:$0xff]  }
  0x94   :  { %451 = vmatmul.mubr.bf16.gmra.mrb[28].mxu0 %v2361_v20 }
  0x95   :  { %1356 = vmatpush1.bf16.msra.mxu0 %v2421_v22 }
  0x96   :  { %564 = vmatmul.mubr.bf16.gmra.mrb[28].mxu1 %v2361_v20  ;;  %1357 = vmatprep.subr.bf16.mxu0 %v2428_v24  ;;  %v2444_v20 = vld [vmem:[#allocation7 + $0x1cc] ss:$12 sps:$4 sm:$0xff]  }
  0x99   :  { %1358 = vmatpush1.bf16.msra.mxu0 %v2426_v26 }
  0x9a   :  { %1440 = vmatprep.subr.bf16.mxu0 %v2431_v27 }
 0x12f   :  { %v382_v35 = vpop.f32.mrb[0].mxu0  ;;  %v495_v11 = vpop.f32.mrb[0].mxu1 }
 0x130   :  { %v383_v36 = vadd.f32 %v382_v35, %v2676_v33  ;;  %v384_v37 = vpop.f32.mrb[1].mxu0  ;;  %v496_v16 = vadd.f32 %v495_v11, %v2692_v2  ;;  %v497_v17 = vpop.f32.mrb[1].mxu1 }
 0x131   :  { %v385_v38 = vadd.f32 %v384_v37, %v2679_v34  ;;  %v386_v39 = vpop.f32.mrb[2].mxu0  ;;  %v498_v22 = vadd.f32 %v497_v17, %v2694_v7  ;;  %v499_v23 = vpop.f32.mrb[2].mxu1 }
 0x132   :  { %v387_v40 = vadd.f32 %v386_v39, %v2676_v33  ;;  %v388_v41 = vpop.f32.mrb[3].mxu0  ;;  %v574_v43 = vmax.f32 %v383_v36, 0.0  ;;  %v576_v26 = vmax.f32 %v496_v16, 0.0  ;;  %v500_v27 = vadd.f32 %v499_v23, %v2692_v2  ;;  %v501_v28 = vpop.f32.mrb[3].mxu1  ;;  %v2457_v39 = vld [vmem:[#allocation7 + $0x1d0] ss:$12 sps:$4 sm:$0xff]  }
 0x133   :  { %v389_v42 = vadd.f32 %v388_v41, %v2679_v34  ;;  %v575_v45 = vmax.f32 %v385_v38, 0.0  ;;  %v577_v35 = vmax.f32 %v498_v22, 0.0  ;;  %v502_v36 = vadd.f32 %v501_v28, %v2694_v7  ;;  %v2447_v38 = vld [vmem:[#allocation7 + $0x1e4] ss:$12 sps:$4 sm:$0xff]  }
 0x134   :  { %v578_v44 = vmax.f32 %v387_v40, 0.0  ;;  %v580_v40 = vmax.f32 %v500_v27, 0.0 }
 0x135   :  { %v579_v46 = vmax.f32 %v389_v42, 0.0 }
 0x136   :  { %v638_v47 = vpack.c.bf16 %v578_v44, %v574_v43  ;;  %v2464_v43 = vld [vmem:[#allocation7 + $0x2a8] ss:$12 sps:$4 sm:$0xff]   ;;  %v581_v44 = vmax.f32 %v502_v36, 0.0 }
 0x137   :  { %v639_v48 = vpack.c.bf16 %v579_v46, %v575_v45  ;;  %v392_v49 = vpop.f32.mrb[4].mxu0 }
 0x138   :  { %v393_v53 = vadd.f32 %v392_v49, %v2676_v33  ;;  %v394_v54 = vpop.f32.mrb[5].mxu0  ;;  %v2706_v49 = vpack.c.bf16 %v581_v44, %v577_v35 }
 0x139   :  { %v395_v58 = vadd.f32 %v394_v54, %v2679_v34  ;;  %v396_v59 = vpop.f32.mrb[6].mxu0  ;;  %1359 = vmatprep.mubr.bf16.mxu0 %v639_v48  ;;  %1585 = vmatprep.mubr.bf16.mxu1 %v639_v48  ;;  %v2445_v54 = vld [vmem:[#allocation7 + $0x1e0] ss:$12 sps:$4 sm:$0xff]  }
 0x13a   :  { %v397_v60 = vadd.f32 %v396_v59, %v2676_v33  ;;  %v398_v61 = vpop.f32.mrb[7].mxu0  ;;  %1360 = vmatmul.mubr.bf16.vlgmr.msra.gmra.mrb[32].mxu0 %v638_v47  ;;  %1586 = vmatmul.mubr.bf16.vlgmr.msra.gmra.mrb[32].mxu1 %v638_v47  ;;  %v582_v3 = vmax.f32 %v393_v53, 0.0  ;;  %v2704_v47 = vpack.c.bf16 %v580_v40, %v576_v26 }
 0x13b   :  { %v399_v62 = vadd.f32 %v398_v61, %v2679_v34  ;;  %1441 = vmatpush1.bf16.msra.mxu0 %v2429_v50  ;;  %2172 = vmatpush3.bf16.msra.mxu1 %v2433_v51  ;;  %v583_v8 = vmax.f32 %v395_v58, 0.0  ;;  %v505_v50 = vpop.f32.mrb[4].mxu1  ;;  %v2472_v61 = vld [vmem:[#allocation7 + $0x2c0] ss:$12 sps:$4 sm:$0xff]  }
 0x13c   :  { %v586_v4 = vmax.f32 %v397_v60, 0.0  ;;  %1442 = vmatprep.subr.bf16.mxu0 %v2436_v55  ;;  %2173 = vmatprep.subr.bf16.mxu1 %v2440_v56  ;;  %v2465_v55 = vld [vmem:[#allocation7 + $0x1e8] ss:$12 sps:$4 sm:$0xff]   ;;  %v506_v56 = vadd.f32 %v505_v50, %v2692_v2  ;;  %v507_v57 = vpop.f32.mrb[5].mxu1 }
 0x13d   :  { %v587_v9 = vmax.f32 %v399_v62, 0.0  ;;  %v2452_v60 = vld [vmem:[#allocation7 + $0x1fc] ss:$12 sps:$4 sm:$0xff]   ;;  %v508_v62 = vadd.f32 %v507_v57, %v2694_v7 }
 0x13e   :  { %v642_v10 = vpack.c.bf16 %v586_v4, %v582_v3  ;;  %v584_v4 = vmax.f32 %v506_v56, 0.0  ;;  %v2489_v56 = vld [vmem:[#allocation7 + $0x230] ss:$12 sps:$4 sm:$0xff]  }
 0x13f   :  { %v643_v12 = vpack.c.bf16 %v587_v9, %v583_v8  ;;  %1443 = vmatpush1.bf16.msra.mxu0 %v2434_v63  ;;  %v402_v13 = vpop.f32.mrb[8].mxu0  ;;  %2174 = vmatpush3.bf16.msra.mxu1 %v2441_v0  ;;  %v509_v63 = vpop.f32.mrb[6].mxu1  ;;  %v585_v11 = vmax.f32 %v508_v62, 0.0 }
 0x140   :  { %v403_v18 = vadd.f32 %v402_v13, %v2676_v33  ;;  %v404_v19 = vpop.f32.mrb[9].mxu0  ;;  %1444 = vmatprep.subr.bf16.mxu0 %v2439_v5  ;;  %2175 = vmatprep.subr.bf16.mxu1 %v2448_v6  ;;  %v510_v5 = vadd.f32 %v509_v63, %v2692_v2  ;;  %v511_v6 = vpop.f32.mrb[7].mxu1 }
 0x141   :  { %v405_v24 = vadd.f32 %v404_v19, %v2679_v34  ;;  %v406_v25 = vpop.f32.mrb[10].mxu0  ;;  %1369 = vmatprep.mubr.bf16.mxu0 %v643_v12  ;;  %1593 = vmatprep.mubr.bf16.mxu1 %v643_v12  ;;  %v512_v12 = vadd.f32 %v511_v6, %v2694_v7  ;;  %v2480_v19 = vld [vmem:[#allocation7 + $0x2d8] ss:$12 sps:$4 sm:$0xff]   ;;  %v515_v26 = vpop.f32.mrb[8].mxu1 }
 0x142   :  { %v407_v29 = vadd.f32 %v406_v25, %v2676_v33  ;;  %v408_v30 = vpop.f32.mrb[11].mxu0  ;;  %1370 = vmatmul.mubr.bf16.gmra.mrb[36].mxu0 %v642_v10  ;;  %1594 = vmatmul.mubr.bf16.gmra.mrb[36].mxu1 %v642_v10  ;;  %v590_v41 = vmax.f32 %v403_v18, 0.0  ;;  %v2450_v10 = vld [vmem:[#allocation7 + $0x1f8] ss:$12 sps:$4 sm:$0xff]   ;;  %v588_v16 = vmax.f32 %v510_v5, 0.0  ;;  %v517_v35 = vpop.f32.mrb[9].mxu1 }
 0x143   :  { %v409_v37 = vadd.f32 %v408_v30, %v2679_v34  ;;  %1445 = vmatpush1.bf16.msra.mxu0 %v2437_v14  ;;  %2176 = vmatpush3.bf16.msra.mxu1 %v2449_v15  ;;  %v591_v45 = vmax.f32 %v405_v24, 0.0  ;;  %v2455_v14 = vld [vmem:[#allocation7 + $0x214] ss:$12 sps:$4 sm:$0xff]   ;;  %v2481_v30 = vld [vmem:[#allocation7 + $0x218] ss:$12 sps:$4 sm:$0xff]   ;;  %v518_v40 = vadd.f32 %v517_v35, %v2694_v7 }
 0x144   :  { %v594_v42 = vmax.f32 %v407_v29, 0.0  ;;  %1446 = vmatprep.subr.bf16.mxu0 %v2444_v20  ;;  %2177 = vmatprep.subr.bf16.mxu1 %v2456_v21  ;;  %v2473_v15 = vld [vmem:[#allocation7 + $0x200] ss:$12 sps:$4 sm:$0xff]   ;;  %v589_v20 = vmax.f32 %v512_v12, 0.0  ;;  %v2716_v23 = vpack.c.bf16 %v588_v16, %v584_v4  ;;  %v2453_v29 = vld [vmem:[#allocation7 + $0x210] ss:$12 sps:$4 sm:$0xff]  }
 0x145   :  { %v595_v46 = vmax.f32 %v409_v37, 0.0 }
 0x146   :  { %v646_v48 = vpack.c.bf16 %v594_v42, %v590_v41  ;;  %v2718_v25 = vpack.c.bf16 %v589_v20, %v585_v11  ;;  %v519_v41 = vpop.f32.mrb[10].mxu1 }
 0x147   :  { %v647_v51 = vpack.c.bf16 %v595_v46, %v591_v45  ;;  %1447 = vmatpush1.bf16.msra.mxu0 %v2442_v31  ;;  %v412_v53 = vpop.f32.mrb[12].mxu0  ;;  %2178 = vmatpush3.bf16.msra.mxu1 %v2457_v39  ;;  %v516_v31 = vadd.f32 %v515_v26, %v2692_v2  ;;  %v2488_v39 = vld [vmem:[#allocation7 + $0x2f0] ss:$12 sps:$4 sm:$0xff]   ;;  %v520_v45 = vadd.f32 %v519_v41, %v2692_v2  ;;  %v521_v46 = vpop.f32.mrb[11].mxu1 }
 0x148   :  { %v413_v58 = vadd.f32 %v412_v53, %v2676_v33  ;;  %v414_v59 = vpop.f32.mrb[13].mxu0  ;;  %1448 = vmatprep.subr.bf16.mxu0 %v2447_v38  ;;  %2179 = vmatprep.subr.bf16.mxu1 %v2464_v43  ;;  %v2460_v38 = vld [vmem:[#allocation7 + $0x22c] ss:$12 sps:$4 sm:$0xff]   ;;  %v522_v53 = vadd.f32 %v521_v46, %v2694_v7  ;;  %v2469_v46 = vld [vmem:[#allocation7 + $0x270] ss:$12 sps:$4 sm:$0xff]  }
 0x149   :  { %v415_v0 = vadd.f32 %v414_v59, %v2679_v34  ;;  %v416_v3 = vpop.f32.mrb[14].mxu0  ;;  %1379 = vmatprep.mubr.bf16.mxu0 %v647_v51  ;;  %1601 = vmatprep.mubr.bf16.mxu1 %v647_v51  ;;  %v592_v44 = vmax.f32 %v516_v31, 0.0  ;;  %v593_v51 = vmax.f32 %v518_v40, 0.0  ;;  %v596_v57 = vmax.f32 %v520_v45, 0.0  ;;  %v525_v5 = vpop.f32.mrb[12].mxu1 }
 0x14a   :  { %v417_v8 = vadd.f32 %v416_v3, %v2676_v33  ;;  %v418_v9 = vpop.f32.mrb[15].mxu0  ;;  %1380 = vmatmul.mubr.bf16.gmra.mrb[40].mxu0 %v646_v48  ;;  %1602 = vmatmul.mubr.bf16.gmra.mrb[40].mxu1 %v646_v48  ;;  %v598_v17 = vmax.f32 %v413_v58, 0.0  ;;  %v527_v11 = vpop.f32.mrb[13].mxu1 }
 0x14b   :  { %v419_v13 = vadd.f32 %v418_v9, %v2679_v34  ;;  %1449 = vmatpush1.bf16.msra.mxu0 %v2445_v54  ;;  %2180 = vmatpush3.bf16.msra.mxu1 %v2465_v55  ;;  %v599_v21 = vmax.f32 %v415_v0, 0.0  ;;  %v2458_v55 = vld [vmem:[#allocation7 + $0x228] ss:$12 sps:$4 sm:$0xff]   ;;  %v2728_v0 = vpack.c.bf16 %v596_v57, %v592_v44  ;;  %v2461_v9 = vld [vmem:[#allocation7 + $0x240] ss:$12 sps:$4 sm:$0xff]   ;;  %v529_v16 = vpop.f32.mrb[14].mxu1 }
 0x14c   :  { %v602_v18 = vmax.f32 %v417_v8, 0.0  ;;  %1450 = vmatprep.subr.bf16.mxu0 %v2452_v60  ;;  %2181 = vmatprep.subr.bf16.mxu1 %v2472_v61  ;;  %v2463_v60 = vld [vmem:[#allocation7 + $0x244] ss:$12 sps:$4 sm:$0xff]   ;;  %v597_v61 = vmax.f32 %v522_v53, 0.0  ;;  %v530_v20 = vadd.f32 %v529_v16, %v2692_v2 }
 0x14d   :  { %v603_v22 = vmax.f32 %v419_v13, 0.0 }
 0x14e   :  { %v650_v24 = vpack.c.bf16 %v602_v18, %v598_v17  ;;  %v2730_v4 = vpack.c.bf16 %v597_v61, %v593_v51 }
 0x14f   :  { %v651_v27 = vpack.c.bf16 %v603_v22, %v599_v21  ;;  %1451 = vmatpush1.bf16.msra.mxu0 %v2450_v10  ;;  %v422_v28 = vpop.f32.mrb[16].mxu0  ;;  %2182 = vmatpush3.bf16.msra.mxu1 %v2473_v15  ;;  %v526_v10 = vadd.f32 %v525_v5, %v2692_v2  ;;  %v528_v15 = vadd.f32 %v527_v11, %v2694_v7  ;;  %v531_v21 = vpop.f32.mrb[15].mxu1 }
 0x150   :  { %v423_v36 = vadd.f32 %v422_v28, %v2676_v33  ;;  %v424_v37 = vpop.f32.mrb[17].mxu0  ;;  %1452 = vmatprep.subr.bf16.mxu0 %v2455_v14  ;;  %2183 = vmatprep.subr.bf16.mxu1 %v2480_v19  ;;  %v2468_v14 = vld [vmem:[#allocation7 + $0x25c] ss:$12 sps:$4 sm:$0xff]  }
 0x151   :  { %v425_v42 = vadd.f32 %v424_v37, %v2679_v34  ;;  %v426_v43 = vpop.f32.mrb[18].mxu0  ;;  %1389 = vmatprep.mubr.bf16.mxu0 %v651_v27  ;;  %1609 = vmatprep.mubr.bf16.mxu1 %v651_v27  ;;  %v600_v19 = vmax.f32 %v526_v10, 0.0  ;;  %v601_v26 = vmax.f32 %v528_v15, 0.0  ;;  %v532_v27 = vadd.f32 %v531_v21, %v2694_v7 }
 0x152   :  { %v427_v48 = vadd.f32 %v426_v43, %v2676_v33  ;;  %v428_v50 = vpop.f32.mrb[19].mxu0  ;;  %1390 = vmatmul.mubr.bf16.gmra.mrb[44].mxu0 %v650_v24  ;;  %1610 = vmatmul.mubr.bf16.gmra.mrb[44].mxu1 %v650_v24  ;;  %v606_v58 = vmax.f32 %v423_v36, 0.0  ;;  %v2471_v36 = vld [vmem:[#allocation7 + $0x274] ss:$12 sps:$4 sm:$0xff]   ;;  %v535_v43 = vpop.f32.mrb[16].mxu1 }
 0x153   :  { %v429_v54 = vadd.f32 %v428_v50, %v2679_v34  ;;  %1453 = vmatpush1.bf16.msra.mxu0 %v2453_v29  ;;  %2184 = vmatpush3.bf16.msra.mxu1 %v2481_v30  ;;  %v607_v62 = vmax.f32 %v425_v42, 0.0  ;;  %v2466_v29 = vld [vmem:[#allocation7 + $0x258] ss:$12 sps:$4 sm:$0xff]   ;;  %v604_v30 = vmax.f32 %v530_v20, 0.0  ;;  %v605_v37 = vmax.f32 %v532_v27, 0.0  ;;  %v537_v50 = vpop.f32.mrb[17].mxu1 }
 0x154   :  { %v610_v59 = vmax.f32 %v427_v48, 0.0  ;;  %1454 = vmatprep.subr.bf16.mxu0 %v2460_v38  ;;  %2185 = vmatprep.subr.bf16.mxu1 %v2488_v39  ;;  %v536_v48 = vadd.f32 %v535_v43, %v2692_v2 }
 0x155   :  { %v611_v63 = vmax.f32 %v429_v54, 0.0  ;;  %v2740_v40 = vpack.c.bf16 %v604_v30, %v600_v19  ;;  %v2742_v42 = vpack.c.bf16 %v605_v37, %v601_v26  ;;  %v2476_v54 = vld [vmem:[#allocation7 + $0x28c] ss:$12 sps:$4 sm:$0xff]  }
 0x156   :  { %v654_v3 = vpack.c.bf16 %v610_v59, %v606_v58  ;;  %v608_v59 = vmax.f32 %v536_v48, 0.0  ;;  %v2482_v48 = vld [vmem:[#allocation7 + $0x2b8] ss:$12 sps:$4 sm:$0xff]  }
 0x157   :  { %v655_v6 = vpack.c.bf16 %v611_v63, %v607_v62  ;;  %1455 = vmatpush1.bf16.msra.mxu0 %v2458_v55  ;;  %v432_v8 = vpop.f32.mrb[20].mxu0  ;;  %2186 = vmatpush3.bf16.msra.mxu1 %v2489_v56  ;;  %v538_v55 = vadd.f32 %v537_v50, %v2694_v7  ;;  %v539_v56 = vpop.f32.mrb[18].mxu1 }
 0x158   :  { %v433_v12 = vadd.f32 %v432_v8, %v2676_v33  ;;  %v434_v13 = vpop.f32.mrb[21].mxu0  ;;  %1456 = vmatprep.subr.bf16.mxu0 %v2463_v60  ;;  %v540_v60 = vadd.f32 %v539_v56, %v2692_v2  ;;  %v541_v61 = vpop.f32.mrb[19].mxu1  ;;  %v2474_v8 = vld [vmem:[#allocation7 + $0x288] ss:$12 sps:$4 sm:$0xff]  }
 0x159   :  { %v435_v17 = vadd.f32 %v434_v13, %v2679_v34  ;;  %v436_v18 = vpop.f32.mrb[22].mxu0  ;;  %1399 = vmatprep.mubr.bf16.mxu0 %v655_v6  ;;  %1617 = vmatprep.mubr.bf16.mxu1 %v655_v6  ;;  %v542_v5 = vadd.f32 %v541_v61, %v2694_v7  ;;  %v545_v19 = vpop.f32.mrb[20].mxu1 }
 0x15a   :  { %v437_v22 = vadd.f32 %v436_v18, %v2676_v33  ;;  %v438_v24 = vpop.f32.mrb[23].mxu0  ;;  %1400 = vmatmul.mubr.bf16.gmra.mrb[48].mxu0 %v654_v3  ;;  %1618 = vmatmul.mubr.bf16.gmra.mrb[48].mxu1 %v654_v3  ;;  %v614_v31 = vmax.f32 %v433_v12, 0.0  ;;  %v609_v3 = vmax.f32 %v538_v55, 0.0  ;;  %v2479_v12 = vld [vmem:[#allocation7 + $0x2a4] ss:$12 sps:$4 sm:$0xff]   ;;  %v547_v26 = vpop.f32.mrb[21].mxu1 }
 0x15b   :  { %v439_v28 = vadd.f32 %v438_v24, %v2679_v34  ;;  %1457 = vmatpush1.bf16.msra.mxu0 %v2461_v9  ;;  %v615_v38 = vmax.f32 %v435_v17, 0.0  ;;  %v612_v9 = vmax.f32 %v540_v60, 0.0  ;;  %v613_v13 = vmax.f32 %v542_v5, 0.0 }
 0x15c   :  { %v618_v35 = vmax.f32 %v437_v22, 0.0  ;;  %1458 = vmatprep.subr.bf16.mxu0 %v2468_v14  ;;  %v2477_v22 = vld [vmem:[#allocation7 + $0x2a0] ss:$12 sps:$4 sm:$0xff]   ;;  %v546_v24 = vadd.f32 %v545_v19, %v2692_v2  ;;  %v548_v30 = vadd.f32 %v547_v26, %v2694_v7 }
 0x15d   :  { %v619_v39 = vmax.f32 %v439_v28, 0.0  ;;  %v2752_v16 = vpack.c.bf16 %v612_v9, %v608_v59  ;;  %v2754_v18 = vpack.c.bf16 %v613_v13, %v609_v3  ;;  %v2492_v3 = vld [vmem:[#allocation7 + $0x2ec] ss:$12 sps:$4 sm:$0xff]   ;;  %v2490_v13 = vld [vmem:[#allocation7 + $0x2e8] ss:$12 sps:$4 sm:$0xff]  }
 0x15e   :  { %v658_v41 = vpack.c.bf16 %v618_v35, %v614_v31  ;;  %v549_v31 = vpop.f32.mrb[22].mxu1  ;;  %v616_v37 = vmax.f32 %v546_v24, 0.0 }
 0x15f   :  { %v659_v44 = vpack.c.bf16 %v619_v39, %v615_v38  ;;  %1459 = vmatpush1.bf16.msra.mxu0 %v2466_v29  ;;  %v442_v45 = vpop.f32.mrb[24].mxu0  ;;  %v2484_v29 = vld [vmem:[#allocation7 + $0x2bc] ss:$12 sps:$4 sm:$0xff]   ;;  %v550_v38 = vadd.f32 %v549_v31, %v2692_v2  ;;  %v551_v39 = vpop.f32.mrb[23].mxu1 }
 0x160   :  { %v443_v51 = vadd.f32 %v442_v45, %v2676_v33  ;;  %v444_v53 = vpop.f32.mrb[25].mxu0  ;;  %1460 = vmatprep.subr.bf16.mxu0 %v2471_v36  ;;  %v552_v45 = vadd.f32 %v551_v39, %v2694_v7 }
 0x161   :  { %v445_v57 = vadd.f32 %v444_v53, %v2679_v34  ;;  %v446_v58 = vpop.f32.mrb[26].mxu0  ;;  %1409 = vmatprep.mubr.bf16.mxu0 %v659_v44  ;;  %1625 = vmatprep.mubr.bf16.mxu1 %v659_v44  ;;  %v617_v44 = vmax.f32 %v548_v30, 0.0  ;;  %v620_v50 = vmax.f32 %v550_v38, 0.0  ;;  %v555_v60 = vpop.f32.mrb[24].mxu1 }
 0x162   :  { %v447_v62 = vadd.f32 %v446_v58, %v2676_v33  ;;  %v448_v63 = vpop.f32.mrb[27].mxu0  ;;  %1410 = vmatmul.mubr.bf16.gmra.mrb[52].mxu0 %v658_v41  ;;  %1626 = vmatmul.mubr.bf16.gmra.mrb[52].mxu1 %v658_v41  ;;  %v622_v10 = vmax.f32 %v443_v51, 0.0  ;;  %v621_v55 = vmax.f32 %v552_v45, 0.0 }
 0x163   :  { %v449_v6 = vadd.f32 %v448_v63, %v2679_v34  ;;  %1461 = vmatpush1.bf16.msra.mxu0 %v2469_v46  ;;  %v623_v14 = vmax.f32 %v445_v57, 0.0  ;;  %v2764_v58 = vpack.c.bf16 %v620_v50, %v616_v37  ;;  %v557_v63 = vpop.f32.mrb[25].mxu1 }
 0x164   :  { %v626_v11 = vmax.f32 %v447_v62, 0.0  ;;  %1462 = vmatprep.subr.bf16.mxu0 %v2476_v54  ;;  %v2487_v54 = vld [vmem:[#allocation7 + $0x2d4] ss:$12 sps:$4 sm:$0xff]   ;;  %v661_v59 = vpack.c.bf16 %v621_v55, %v617_v44  ;;  %v2485_v62 = vld [vmem:[#allocation7 + $0x2d0] ss:$12 sps:$4 sm:$0xff]   ;;  %v558_v5 = vadd.f32 %v557_v63, %v2694_v7 }
 0x165   :  { %v627_v15 = vmax.f32 %v449_v6, 0.0  ;;  %v559_v6 = vpop.f32.mrb[26].mxu1 }
 0x166   :  { %v662_v17 = vpack.c.bf16 %v626_v11, %v622_v10  ;;  %v560_v9 = vadd.f32 %v559_v6, %v2692_v2  ;;  %v561_v10 = vpop.f32.mrb[27].mxu1  ;;  %v625_v11 = vmax.f32 %v558_v5, 0.0 }
 0x167   :  { %v663_v20 = vpack.c.bf16 %v627_v15, %v623_v14  ;;  %1463 = vmatpush1.bf16.msra.mxu0 %v2474_v8  ;;  %v452_v21 = vpop.f32.mrb[28].mxu0 }
 0x168   :  { %v453_v27 = vadd.f32 %v452_v21, %v2676_v33  ;;  %v454_v28 = vpop.f32.mrb[29].mxu0  ;;  %1464 = vmatprep.subr.bf16.mxu0 %v2479_v12  ;;  %v562_v12 = vadd.f32 %v561_v10, %v2694_v7  ;;  %v628_v14 = vmax.f32 %v560_v9, 0.0 }
 0x169   :  { %v455_v35 = vadd.f32 %v454_v28, %v2679_v34  ;;  %v456_v36 = vpop.f32.mrb[30].mxu0  ;;  %1419 = vmatprep.mubr.bf16.mxu0 %v663_v20  ;;  %1633 = vmatprep.mubr.bf16.mxu1 %v663_v20  ;;  %v565_v20 = vpop.f32.mrb[28].mxu1 }
 0x16a   :  { %v457_v41 = vadd.f32 %v456_v36, %v2676_v33  ;;  %v458_v43 = vpop.f32.mrb[31].mxu0  ;;  %1420 = vmatmul.mubr.bf16.gmra.mrb[56].mxu0 %v662_v17  ;;  %1634 = vmatmul.mubr.bf16.gmra.mrb[56].mxu1 %v662_v17  ;;  %v630_v51 = vmax.f32 %v453_v27, 0.0  ;;  %v629_v15 = vmax.f32 %v562_v12, 0.0  ;;  %v566_v21 = vadd.f32 %v565_v20, %v2692_v2 }
 0x16b   :  { %v459_v46 = vadd.f32 %v458_v43, %v2679_v34  ;;  %1465 = vmatpush1.bf16.msra.mxu0 %v2477_v22  ;;  %v631_v56 = vmax.f32 %v455_v35, 0.0  ;;  %v556_v34 = vadd.f32 %v555_v60, %v2692_v2  ;;  %v567_v22 = vpop.f32.mrb[29].mxu1 }
 0x16c   :  { %v634_v53 = vmax.f32 %v457_v41, 0.0  ;;  %1466 = vmatprep.subr.bf16.mxu0 %v2484_v29  ;;  %v665_v19 = vpack.c.bf16 %v629_v15, %v625_v11  ;;  %v568_v24 = vadd.f32 %v567_v22, %v2694_v7  ;;  %v569_v26 = vpop.f32.mrb[30].mxu1  ;;  %v632_v27 = vmax.f32 %v566_v21, 0.0 }
 0x16d   :  { %v635_v57 = vmax.f32 %v459_v46, 0.0  ;;  %v624_v8 = vmax.f32 %v556_v34, 0.0  ;;  %v570_v28 = vadd.f32 %v569_v26, %v2692_v2  ;;  %v571_v29 = vpop.f32.mrb[31].mxu1  ;;  %v1795_v26 = vld [vmem:[%s3027_s5] sm:$0x7] }
 0x16e   :  { %v666_v33 = vpack.c.bf16 %v634_v53, %v630_v51  ;;  %v572_v30 = vadd.f32 %v571_v29, %v2694_v7 }
 0x16f   :  { %v667_v61 = vpack.c.bf16 %v635_v57, %v631_v56  ;;  %1467 = vmatpush1.bf16.msra.mxu0 %v2482_v48  ;;  %v664_v17 = vpack.c.bf16 %v628_v14, %v624_v8  ;;  %v636_v31 = vmax.f32 %v570_v28, 0.0 }
 0x170   :  { %1468 = vmatprep.subr.bf16.mxu0 %v2487_v54  ;;  %v637_v35 = vmax.f32 %v572_v30, 0.0  ;;  %v2841_v30 = vrot.slane %v1795_v26, %v2668_v1 }
 0x171   :  { %1429 = vmatprep.mubr.bf16.mxu0 %v667_v61  ;;  %1641 = vmatprep.mubr.bf16.mxu1 %v667_v61  ;;  %v668_v36 = vpack.c.bf16 %v636_v31, %v632_v27 }
 0x172   :  { %1430 = vmatmul.mubr.bf16.gmra.mrb[60].mxu0 %v666_v33  ;;  %1642 = vmatmul.mubr.bf16.gmra.mrb[60].mxu1 %v666_v33 }
 0x173   :  { %1469 = vmatpush1.bf16.msra.mxu0 %v2485_v62  ;;  %1472 = vmatprep.mubr.bf16.mxu0 %v2706_v49 }
 0x174   :  { %1470 = vmatprep.subr.bf16.mxu0 %v2492_v3  ;;  %1682 = vmatprep.mubr.bf16.mxu1 %v2706_v49  ;;  %v633_v49 = vmax.f32 %v568_v24, 0.0 }
 0x176   :  { %v669_v37 = vpack.c.bf16 %v637_v35, %v633_v49 }
 0x177   :  { %1471 = vmatpush1.bf16.msra.mxu0 %v2490_v13 }
 0x17a   :  { %1473 = vmatmul.mubr.bf16.vlgmr.msra.gmra.mrb[32].mxu0 %v2704_v47  ;;  %1683 = vmatmul.mubr.bf16.vlgmr.msra.gmra.mrb[64].mxu1 %v2704_v47 }
 0x17b   :  { %1482 = vmatprep.mubr.bf16.mxu0 %v2718_v25  ;;  %1690 = vmatprep.mubr.bf16.mxu1 %v2718_v25 }
 0x182   :  { %1483 = vmatmul.mubr.bf16.gmra.mrb[36].mxu0 %v2716_v23  ;;  %1691 = vmatmul.mubr.bf16.gmra.mrb[68].mxu1 %v2716_v23 }
 0x183   :  { %1492 = vmatprep.mubr.bf16.mxu0 %v2730_v4  ;;  %1698 = vmatprep.mubr.bf16.mxu1 %v2730_v4 }
 0x18a   :  { %1493 = vmatmul.mubr.bf16.gmra.mrb[40].mxu0 %v2728_v0  ;;  %1699 = vmatmul.mubr.bf16.gmra.mrb[72].mxu1 %v2728_v0 }
 0x18b   :  { %1502 = vmatprep.mubr.bf16.mxu0 %v2742_v42  ;;  %1706 = vmatprep.mubr.bf16.mxu1 %v2742_v42 }
 0x192   :  { %1503 = vmatmul.mubr.bf16.gmra.mrb[44].mxu0 %v2740_v40  ;;  %1707 = vmatmul.mubr.bf16.gmra.mrb[76].mxu1 %v2740_v40 }
 0x193   :  { %1512 = vmatprep.mubr.bf16.mxu0 %v2754_v18  ;;  %1714 = vmatprep.mubr.bf16.mxu1 %v2754_v18 }
 0x19a   :  { %1513 = vmatmul.mubr.bf16.gmra.mrb[48].mxu0 %v2752_v16  ;;  %1715 = vmatmul.mubr.bf16.gmra.mrb[80].mxu1 %v2752_v16 }
 0x19b   :  { %1522 = vmatprep.mubr.bf16.mxu0 %v661_v59  ;;  %1722 = vmatprep.mubr.bf16.mxu1 %v661_v59 }
 0x1a2   :  { %1523 = vmatmul.mubr.bf16.gmra.mrb[52].mxu0 %v2764_v58  ;;  %1723 = vmatmul.mubr.bf16.gmra.mrb[84].mxu1 %v2764_v58 }
 0x1a3   :  { %1532 = vmatprep.mubr.bf16.mxu0 %v665_v19  ;;  %1730 = vmatprep.mubr.bf16.mxu1 %v665_v19  ;;  %v798_v19 = vld [vmem:[%s3026_s4] sm:$0x7] }
 0x1a4   :  { %v2828_v22 = vrot.slane %v798_v19, %v2668_v1  ;;  %v2831_v24 = vrot.slane %v798_v19, %v2685_v52  ;;  %v2837_v27 = vrot.slane %v798_v19, %v2673_v32 }
 0x1aa   :  { %1533 = vmatmul.mubr.bf16.gmra.mrb[56].mxu0 %v664_v17  ;;  %1731 = vmatmul.mubr.bf16.gmra.mrb[88].mxu1 %v664_v17 }
 0x1ab   :  { %1542 = vmatprep.mubr.bf16.mxu0 %v669_v37  ;;  %1738 = vmatprep.mubr.bf16.mxu1 %v669_v37 }
 0x1b2   :  { %1543 = vmatmul.mubr.bf16.gmra.mrb[60].mxu0 %v668_v36  ;;  %1739 = vmatmul.mubr.bf16.gmra.mrb[92].mxu1 %v668_v36 }
 0x20d   :  { %v2123_v2 = vpop.f32.mrb[32].mxu1 }
 0x20e   :  { %v2124_v7 = vpop.f32.mrb[33].mxu1 }
 0x20f   :  { %v2125_v47 = vadd.f32 %v2124_v7, %v2123_v2  ;;  %v2126_v23 = vpop.f32.mrb[34].mxu1  ;;  %v2846_v2 = vrot.slane %v1795_v26, %v2673_v32 }
 0x210   :  { %v2127_v25 = vpop.f32.mrb[35].mxu1 }
 0x211   :  { %v2128_v0 = vadd.f32 %v2127_v25, %v2126_v23  ;;  %v1588_v36 = vadd.f32 %v2125_v47, %v2831_v24 }
 0x215   :  { %v2129_v4 = vpop.f32.mrb[36].mxu1 }
 0x216   :  { %v2130_v40 = vpop.f32.mrb[37].mxu1 }
 0x217   :  { %v2796_v42 = vadd.f32 %v2130_v40, %v2129_v4  ;;  %v2132_v16 = vpop.f32.mrb[38].mxu1  ;;  %v1591_v4 = vadd.f32 %v2128_v0, %v2831_v24 }
 0x218   :  { %v2133_v18 = vpop.f32.mrb[39].mxu1 }
 0x219   :  { %v2798_v38 = vadd.f32 %v2133_v18, %v2132_v16 }
 0x21d   :  { %v2135_v39 = vpop.f32.mrb[40].mxu1 }
 0x21e   :  { %v2136_v41 = vpop.f32.mrb[41].mxu1 }
 0x21f   :  { %v2800_v43 = vadd.f32 %v2136_v41, %v2135_v39  ;;  %v2138_v44 = vpop.f32.mrb[42].mxu1  ;;  %v2851_v39 = vrot.slane %v1795_v26, %v2685_v52 }
 0x220   :  { %v2139_v45 = vpop.f32.mrb[43].mxu1 }
 0x221   :  { %v2802_v46 = vadd.f32 %v2139_v45, %v2138_v44 }
 0x225   :  { %v2141_v48 = vpop.f32.mrb[44].mxu1 }
 0x226   :  { %v2142_v50 = vpop.f32.mrb[45].mxu1 }
 0x227   :  { %v2804_v51 = vadd.f32 %v2142_v50, %v2141_v48  ;;  %v2144_v53 = vpop.f32.mrb[46].mxu1 }
 0x228   :  { %v2145_v54 = vpop.f32.mrb[47].mxu1 }
 0x229   :  { %v2806_v55 = vadd.f32 %v2145_v54, %v2144_v53 }
 0x22d   :  { %v2147_v56 = vpop.f32.mrb[48].mxu1 }
 0x22e   :  { %v2148_v57 = vpop.f32.mrb[49].mxu1 }
 0x22f   :  { %v2808_v58 = vadd.f32 %v2148_v57, %v2147_v56  ;;  %v2150_v33 = vpop.f32.mrb[50].mxu1 }
 0x230   :  { %v2151_v59 = vpop.f32.mrb[51].mxu1 }
 0x231   :  { %v2810_v60 = vadd.f32 %v2151_v59, %v2150_v33 }
 0x235   :  { %v2153_v61 = vpop.f32.mrb[52].mxu1 }
 0x236   :  { %v2154_v62 = vpop.f32.mrb[53].mxu1 }
 0x237   :  { %v2812_v34 = vadd.f32 %v2154_v62, %v2153_v61  ;;  %v2156_v63 = vpop.f32.mrb[54].mxu1 }
 0x238   :  { %v2157_v3 = vpop.f32.mrb[55].mxu1 }
 0x239   :  { %v2814_v5 = vadd.f32 %v2157_v3, %v2156_v63  ;;  %v1596_v63 = vadd.f32 %v2796_v42, %v2831_v24 }
 0x23d   :  { %v2159_v6 = vpop.f32.mrb[56].mxu1 }
 0x23e   :  { %v2160_v8 = vpop.f32.mrb[57].mxu1 }
 0x23f   :  { %v2816_v9 = vadd.f32 %v2160_v8, %v2159_v6  ;;  %v2162_v10 = vpop.f32.mrb[58].mxu1 }
 0x240   :  { %v2163_v11 = vpop.f32.mrb[59].mxu1 }
 0x241   :  { %v2818_v12 = vadd.f32 %v2163_v11, %v2162_v10 }
 0x245   :  { %v2165_v13 = vpop.f32.mrb[60].mxu1 }
 0x246   :  { %v2166_v14 = vpop.f32.mrb[61].mxu1 }
 0x247   :  { %v2820_v15 = vadd.f32 %v2166_v14, %v2165_v13  ;;  %v2168_v17 = vpop.f32.mrb[62].mxu1 }
 0x248   :  { %v2169_v20 = vpop.f32.mrb[63].mxu1 }
 0x249   :  { %v2825_v21 = vadd.f32 %v2169_v20, %v2168_v17  ;;  %v1599_v20 = vadd.f32 %v2798_v38, %v2831_v24 }
 0x24d   :  { %v1474_v28 = vpop.f32.mrb[32].mxu0  ;;  %v2187_v29 = vpop.f32.mrb[64].mxu1 }
 0x24e   :  { %v2235_v49 = vadd.f32 %v1474_v28, %v2828_v22  ;;  %v1476_v31 = vpop.f32.mrb[33].mxu0  ;;  %v2188_v35 = vpop.f32.mrb[65].mxu1 }
 0x24f   :  { %v2236_v37 = vadd.f32 %v1476_v31, %v2837_v27  ;;  %v2189_v7 = vadd.f32 %v2188_v35, %v2187_v29  ;;  %v1478_v23 = vpop.f32.mrb[34].mxu0  ;;  %v2190_v25 = vpop.f32.mrb[66].mxu1 }
 0x250   :  { %v1747_v40 = vmax.f32 %v2235_v49, 0.0  ;;  %v2237_v16 = vadd.f32 %v1478_v23, %v2828_v22  ;;  %v1480_v18 = vpop.f32.mrb[35].mxu0  ;;  %v2191_v1 = vpop.f32.mrb[67].mxu1 }
 0x251   :  { %v1748_v41 = vmax.f32 %v2236_v37, 0.0  ;;  %v1685_v47 = vadd.f32 %v2189_v7, %v1588_v36  ;;  %v2238_v44 = vadd.f32 %v1480_v18, %v2837_v27  ;;  %v2192_v45 = vadd.f32 %v2191_v1, %v2190_v25 }
 0x252   :  { %v1812_v32 = vmul.f32 %v2841_v30, %v1747_v40  ;;  %v1750_v48 = vmax.f32 %v2237_v16, 0.0 }
 0x253   :  { %v1813_v50 = vmul.f32 %v2846_v2, %v1748_v41  ;;  %v1749_v53 = vmax.f32 %v1685_v47, 0.0  ;;  %v1751_v0 = vmax.f32 %v2238_v44, 0.0  ;;  %v1688_v54 = vadd.f32 %v2192_v45, %v1591_v4 }
 0x254   :  { %v1815_v56 = vmul.f32 %v2841_v30, %v1750_v48  ;;  %v1604_v48 = vadd.f32 %v2800_v43, %v2831_v24 }
 0x255   :  { %v1816_v57 = vmul.f32 %v2846_v2, %v1751_v0  ;;  %v1752_v33 = vmax.f32 %v1688_v54, 0.0  ;;  %v1484_v52 = vpop.f32.mrb[36].mxu0  ;;  %v2193_v59 = vpop.f32.mrb[68].mxu1  ;;  %v1814_v61 = vmul.f32 %v2851_v39, %v1749_v53  ;;  %v1860_v62 = vadd.f32 %v1813_v50, %v1812_v32 }
 0x256   :  { %v2239_v3 = vadd.f32 %v1484_v52, %v2828_v22  ;;  %v1486_v6 = vpop.f32.mrb[37].mxu0  ;;  %v2194_v8 = vpop.f32.mrb[69].mxu1 }
 0x257   :  { %v2240_v10 = vadd.f32 %v1486_v6, %v2837_v27  ;;  %v2195_v11 = vadd.f32 %v2194_v8, %v2193_v59  ;;  %v1488_v13 = vpop.f32.mrb[38].mxu0  ;;  %v2196_v14 = vpop.f32.mrb[70].mxu1  ;;  %v1861_v17 = vadd.f32 %v1860_v62, %v1814_v61  ;;  %v1817_v19 = vmul.f32 %v2851_v39, %v1752_v33 }
 0x258   :  { %v1753_v26 = vmax.f32 %v2239_v3, 0.0  ;;  %v2241_v28 = vadd.f32 %v1488_v13, %v2828_v22  ;;  %v1490_v29 = vpop.f32.mrb[39].mxu0  ;;  %v2197_v42 = vpop.f32.mrb[71].mxu1  ;;  %v1864_v49 = vadd.f32 %v1816_v57, %v1815_v56  ;;  %v1607_v61 = vadd.f32 %v2802_v46, %v2831_v24 }
 0x259   :  { %v1754_v31 = vmax.f32 %v2240_v10, 0.0  ;;  %v1693_v35 = vadd.f32 %v2195_v11, %v1596_v63  ;;  %v2242_v36 = vadd.f32 %v1490_v29, %v2837_v27  ;;  %v2198_v37 = vadd.f32 %v2197_v42, %v2196_v14  ;;  %1862 = vadd.xlane.f32.xlu0 %v1861_v17 }
 0x25a   :  { %v1818_v7 = vmul.f32 %v2841_v30, %v1753_v26  ;;  %v1756_v23 = vmax.f32 %v2241_v28, 0.0  ;;  %v1865_v25 = vadd.f32 %v1864_v49, %v1817_v19 }
 0x25b   :  { %v1819_v4 = vmul.f32 %v2846_v2, %v1754_v31  ;;  %v1755_v40 = vmax.f32 %v1693_v35, 0.0  ;;  %v1757_v38 = vmax.f32 %v2242_v36, 0.0  ;;  %v1696_v16 = vadd.f32 %v2198_v37, %v1599_v20 }
 0x25c   :  { %v1821_v18 = vmul.f32 %v2841_v30, %v1756_v23 }
 0x25d   :  { %v1822_v1 = vmul.f32 %v2846_v2, %v1757_v38  ;;  %v1758_v41 = vmax.f32 %v1696_v16, 0.0  ;;  %v1494_v47 = vpop.f32.mrb[40].mxu0  ;;  %v2199_v44 = vpop.f32.mrb[72].mxu1  ;;  %1866 = vadd.xlane.f32.xlu0 %v1865_v25  ;;  %v1820_v45 = vmul.f32 %v2851_v39, %v1755_v40  ;;  %v1868_v32 = vadd.f32 %v1819_v4, %v1818_v7 }
 0x25e   :  { %v2243_v50 = vadd.f32 %v1494_v47, %v2828_v22  ;;  %v1496_v53 = vpop.f32.mrb[41].mxu0  ;;  %v2200_v0 = vpop.f32.mrb[73].mxu1  ;;  %v1612_v7 = vadd.f32 %v2804_v51, %v2831_v24  ;;  %v1615_v47 = vadd.f32 %v2806_v55, %v2831_v24 }
 0x25f   :  { %v2244_v54 = vadd.f32 %v1496_v53, %v2837_v27  ;;  %v2201_v56 = vadd.f32 %v2200_v0, %v2199_v44  ;;  %v1498_v57 = vpop.f32.mrb[42].mxu0  ;;  %v2202_v33 = vpop.f32.mrb[74].mxu1  ;;  %v1869_v52 = vadd.f32 %v1868_v32, %v1820_v45  ;;  %v1823_v59 = vmul.f32 %v2851_v39, %v1758_v41 }
 0x260   :  { %v1759_v62 = vmax.f32 %v2243_v50, 0.0  ;;  %v2245_v63 = vadd.f32 %v1498_v57, %v2828_v22  ;;  %v1500_v3 = vpop.f32.mrb[43].mxu0  ;;  %v2203_v43 = vpop.f32.mrb[75].mxu1  ;;  %v1872_v6 = vadd.f32 %v1822_v1, %v1821_v18 }
 0x261   :  { %v1760_v8 = vmax.f32 %v2244_v54, 0.0  ;;  %v1701_v10 = vadd.f32 %v2201_v56, %v1604_v48  ;;  %v2246_v11 = vadd.f32 %v1500_v3, %v2837_v27  ;;  %v2204_v13 = vadd.f32 %v2203_v43, %v2202_v33  ;;  %1870 = vadd.xlane.f32.xlu1 %v1869_v52 }
 0x262   :  { %v1824_v14 = vmul.f32 %v2841_v30, %v1759_v62  ;;  %v1762_v17 = vmax.f32 %v2245_v63, 0.0  ;;  %v1873_v19 = vadd.f32 %v1872_v6, %v1823_v59 }
 0x263   :  { %v1825_v20 = vmul.f32 %v2846_v2, %v1760_v8  ;;  %v1761_v26 = vmax.f32 %v1701_v10, 0.0  ;;  %v1763_v46 = vmax.f32 %v2246_v11, 0.0  ;;  %v1704_v28 = vadd.f32 %v2204_v13, %v1607_v61 }
 0x264   :  { %v1827_v29 = vmul.f32 %v2841_v30, %v1762_v17  ;;  %v1620_v11 = vadd.f32 %v2808_v58, %v2831_v24 }
 0x265   :  { %v1828_v42 = vmul.f32 %v2846_v2, %v1763_v46  ;;  %v1764_v49 = vmax.f32 %v1704_v28, 0.0  ;;  %v1504_v31 = vpop.f32.mrb[44].mxu0  ;;  %v2205_v35 = vpop.f32.mrb[76].mxu1  ;;  %1874 = vadd.xlane.f32.xlu1 %v1873_v19  ;;  %v1826_v36 = vmul.f32 %v2851_v39, %v1761_v26  ;;  %v1876_v37 = vadd.f32 %v1825_v20, %v1824_v14 }
 0x266   :  { %v2247_v23 = vadd.f32 %v1504_v31, %v2828_v22  ;;  %v1506_v25 = vpop.f32.mrb[45].mxu0  ;;  %v2206_v4 = vpop.f32.mrb[77].mxu1 }
 0x267   :  { %v2248_v40 = vadd.f32 %v1506_v25, %v2837_v27  ;;  %v2207_v38 = vadd.f32 %v2206_v4, %v2205_v35  ;;  %v1508_v16 = vpop.f32.mrb[46].mxu0  ;;  %v2208_v18 = vpop.f32.mrb[78].mxu1  ;;  %v1877_v1 = vadd.f32 %v1876_v37, %v1826_v36  ;;  %v1829_v41 = vmul.f32 %v2851_v39, %v1764_v49 }
 0x268   :  { %v1765_v44 = vmax.f32 %v2247_v23, 0.0  ;;  %v2249_v45 = vadd.f32 %v1508_v16, %v2828_v22  ;;  %v1510_v32 = vpop.f32.mrb[47].mxu0  ;;  %v2209_v51 = vpop.f32.mrb[79].mxu1  ;;  %v1880_v48 = vadd.f32 %v1828_v42, %v1827_v29  ;;  %v1623_v42 = vadd.f32 %v2810_v60, %v2831_v24 }
 0x269   :  { %v1766_v50 = vmax.f32 %v2248_v40, 0.0  ;;  %v1709_v53 = vadd.f32 %v2207_v38, %v1612_v7  ;;  %v2250_v0 = vadd.f32 %v1510_v32, %v2837_v27  ;;  %v2210_v54 = vadd.f32 %v2209_v51, %v2208_v18  ;;  %1878 = vadd.xlane.f32.xlu0 %v1877_v1 }
 0x26a   :  { %v1830_v56 = vmul.f32 %v2841_v30, %v1765_v44  ;;  %v1768_v57 = vmax.f32 %v2249_v45, 0.0  ;;  %v1881_v33 = vadd.f32 %v1880_v48, %v1829_v41 }
 0x26b   :  { %v1831_v52 = vmul.f32 %v2846_v2, %v1766_v50  ;;  %v1767_v59 = vmax.f32 %v1709_v53, 0.0  ;;  %v1769_v55 = vmax.f32 %v2250_v0, 0.0  ;;  %v1712_v61 = vadd.f32 %v2210_v54, %v1615_v47 }
 0x26c   :  { %v1833_v62 = vmul.f32 %v2841_v30, %v1768_v57  ;;  %1882 = vadd.xlane.f32.xlu1 %v1881_v33  ;;  %v1628_v50 = vadd.f32 %v2812_v34, %v2831_v24 }
 0x26d   :  { %v1834_v63 = vmul.f32 %v2846_v2, %v1769_v55  ;;  %v1770_v3 = vmax.f32 %v1712_v61, 0.0  ;;  %v1514_v43 = vpop.f32.mrb[48].mxu0  ;;  %v2211_v6 = vpop.f32.mrb[80].mxu1  ;;  %v1832_v8 = vmul.f32 %v2851_v39, %v1767_v59  ;;  %v1884_v10 = vadd.f32 %v1831_v52, %v1830_v56 }
 0x26e   :  { %v2251_v13 = vadd.f32 %v1514_v43, %v2828_v22  ;;  %v1516_v14 = vpop.f32.mrb[49].mxu0  ;;  %v2212_v17 = vpop.f32.mrb[81].mxu1  ;;  %v1631_v61 = vadd.f32 %v2814_v5, %v2831_v24 }
 0x26f   :  { %v2252_v19 = vadd.f32 %v1516_v14, %v2837_v27  ;;  %v2213_v20 = vadd.f32 %v2212_v17, %v2211_v6  ;;  %v1518_v26 = vpop.f32.mrb[50].mxu0  ;;  %v2214_v46 = vpop.f32.mrb[82].mxu1  ;;  %v1885_v28 = vadd.f32 %v1884_v10, %v1832_v8  ;;  %v1835_v29 = vmul.f32 %v2851_v39, %v1770_v3 }
 0x270   :  { %v1771_v49 = vmax.f32 %v2251_v13, 0.0  ;;  %v2253_v31 = vadd.f32 %v1518_v26, %v2828_v22  ;;  %v1520_v35 = vpop.f32.mrb[51].mxu0  ;;  %v2215_v58 = vpop.f32.mrb[83].mxu1  ;;  %v1888_v36 = vadd.f32 %v1834_v63, %v1833_v62 }
 0x271   :  { %v1772_v37 = vmax.f32 %v2252_v19, 0.0  ;;  %v1717_v7 = vadd.f32 %v2213_v20, %v1620_v11  ;;  %v2254_v23 = vadd.f32 %v1520_v35, %v2837_v27  ;;  %v2216_v25 = vadd.f32 %v2215_v58, %v2214_v46  ;;  %1886 = vadd.xlane.f32.xlu0 %v1885_v28 }
 0x272   :  { %v1836_v4 = vmul.f32 %v2841_v30, %v1771_v49  ;;  %v1774_v40 = vmax.f32 %v2253_v31, 0.0  ;;  %v1889_v38 = vadd.f32 %v1888_v36, %v1835_v29  ;;  %v1636_v58 = vadd.f32 %v2816_v9, %v2831_v24 }
 0x273   :  { %v1837_v16 = vmul.f32 %v2846_v2, %v1772_v37  ;;  %v1773_v18 = vmax.f32 %v1717_v7, 0.0  ;;  %v1775_v60 = vmax.f32 %v2254_v23, 0.0  ;;  %v1720_v1 = vadd.f32 %v2216_v25, %v1623_v42 }
 0x274   :  { %v1839_v41 = vmul.f32 %v2841_v30, %v1774_v40  ;;  %1890 = vadd.xlane.f32.xlu1 %v1889_v38 }
 0x275   :  { %v1840_v47 = vmul.f32 %v2846_v2, %v1775_v60  ;;  %v1776_v44 = vmax.f32 %v1720_v1, 0.0  ;;  %v1524_v45 = vpop.f32.mrb[52].mxu0  ;;  %v2217_v32 = vpop.f32.mrb[84].mxu1  ;;  %v1838_v51 = vmul.f32 %v2851_v39, %v1773_v18  ;;  %v1892_v48 = vadd.f32 %v1837_v16, %v1836_v4 }
 0x276   :  { %v2255_v53 = vadd.f32 %v1524_v45, %v2828_v22  ;;  %v1526_v0 = vpop.f32.mrb[53].mxu0  ;;  %v2218_v54 = vpop.f32.mrb[85].mxu1  ;;  %v1639_v18 = vadd.f32 %v2818_v12, %v2831_v24 }
 0x277   :  { %v2256_v56 = vadd.f32 %v1526_v0, %v2837_v27  ;;  %v2219_v57 = vadd.f32 %v2218_v54, %v2217_v32  ;;  %v1528_v33 = vpop.f32.mrb[54].mxu0  ;;  %v2220_v52 = vpop.f32.mrb[86].mxu1  ;;  %v1893_v59 = vadd.f32 %v1892_v48, %v1838_v51  ;;  %v1841_v55 = vmul.f32 %v2851_v39, %v1776_v44 }
 0x278   :  { %v1777_v62 = vmax.f32 %v2255_v53, 0.0  ;;  %v2257_v63 = vadd.f32 %v1528_v33, %v2828_v22  ;;  %v1530_v3 = vpop.f32.mrb[55].mxu0  ;;  %v2221_v34 = vpop.f32.mrb[87].mxu1  ;;  %v1896_v43 = vadd.f32 %v1840_v47, %v1839_v41 }
 0x279   :  { %v1778_v6 = vmax.f32 %v2256_v56, 0.0  ;;  %v1725_v8 = vadd.f32 %v2219_v57, %v1628_v50  ;;  %v2258_v10 = vadd.f32 %v1530_v3, %v2837_v27  ;;  %v2222_v11 = vadd.f32 %v2221_v34, %v2220_v52  ;;  %1894 = vadd.xlane.f32.xlu0 %v1893_v59 }
 0x27a   :  { %v1842_v13 = vmul.f32 %v2841_v30, %v1777_v62  ;;  %v1780_v14 = vmax.f32 %v2257_v63, 0.0  ;;  %v1897_v17 = vadd.f32 %v1896_v43, %v1841_v55  ;;  %v1644_v63 = vadd.f32 %v2820_v15, %v2831_v24 }
 0x27b   :  { %v1843_v19 = vmul.f32 %v2846_v2, %v1778_v6  ;;  %v1779_v20 = vmax.f32 %v1725_v8, 0.0  ;;  %v1781_v5 = vmax.f32 %v2258_v10, 0.0  ;;  %v1728_v26 = vadd.f32 %v2222_v11, %v1631_v61 }
 0x27c   :  { %v1845_v46 = vmul.f32 %v2841_v30, %v1780_v14  ;;  %1898 = vadd.xlane.f32.xlu1 %v1897_v17  ;;  %v1647_v17 = vadd.f32 %v2825_v21, %v2831_v24 }
 0x27d   :  { %v1846_v28 = vmul.f32 %v2846_v2, %v1781_v5  ;;  %v1782_v29 = vmax.f32 %v1728_v26, 0.0  ;;  %v1534_v42 = vpop.f32.mrb[56].mxu0  ;;  %v2223_v49 = vpop.f32.mrb[88].mxu1  ;;  %v1844_v31 = vmul.f32 %v2851_v39, %v1779_v20  ;;  %v1900_v35 = vadd.f32 %v1843_v19, %v1842_v13 }
 0x27e   :  { %v2259_v36 = vadd.f32 %v1534_v42, %v2828_v22  ;;  %v1536_v37 = vpop.f32.mrb[57].mxu0  ;;  %v2224_v7 = vpop.f32.mrb[89].mxu1 }
 0x27f   :  { %v2260_v23 = vadd.f32 %v1536_v37, %v2837_v27  ;;  %v2225_v25 = vadd.f32 %v2224_v7, %v2223_v49  ;;  %v1538_v4 = vpop.f32.mrb[58].mxu0  ;;  %v2226_v40 = vpop.f32.mrb[90].mxu1  ;;  %v1901_v38 = vadd.f32 %v1900_v35, %v1844_v31  ;;  %v1847_v16 = vmul.f32 %v2851_v39, %v1782_v29 }
 0x280   :  { %v1783_v60 = vmax.f32 %v2259_v36, 0.0  ;;  %v2261_v1 = vadd.f32 %v1538_v4, %v2828_v22  ;;  %v1540_v41 = vpop.f32.mrb[59].mxu0  ;;  %v2227_v9 = vpop.f32.mrb[91].mxu1  ;;  %v1904_v47 = vadd.f32 %v1846_v28, %v1845_v46 }
 0x281   :  { %v1784_v44 = vmax.f32 %v2260_v23, 0.0  ;;  %v1733_v45 = vadd.f32 %v2225_v25, %v1636_v58  ;;  %v2262_v32 = vadd.f32 %v1540_v41, %v2837_v27  ;;  %v2228_v51 = vadd.f32 %v2227_v9, %v2226_v40  ;;  %1902 = vadd.xlane.f32.xlu0 %v1901_v38 }
 0x282   :  { %v1848_v48 = vmul.f32 %v2841_v30, %v1783_v60  ;;  %v1786_v50 = vmax.f32 %v2261_v1, 0.0  ;;  %v1905_v53 = vadd.f32 %v1904_v47, %v1847_v16  ;;  %v2106_v16 = vld [vmem:[#allocation2] ss:$0 sm:$0xff] }
 0x283   :  { %v1849_v0 = vmul.f32 %v2846_v2, %v1784_v44  ;;  %v1785_v54 = vmax.f32 %v1733_v45, 0.0  ;;  %v1787_v12 = vmax.f32 %v2262_v32, 0.0  ;;  %v1736_v56 = vadd.f32 %v2228_v51, %v1639_v18 }
 0x284   :  { %v1851_v57 = vmul.f32 %v2841_v30, %v1786_v50  ;;  %1906 = vadd.xlane.f32.xlu1 %v1905_v53 }
 0x285   :  { %v1852_v33 = vmul.f32 %v2846_v2, %v1787_v12  ;;  %v1788_v52 = vmax.f32 %v1736_v56, 0.0  ;;  %v1544_v59 = vpop.f32.mrb[60].mxu0  ;;  %v2229_v55 = vpop.f32.mrb[92].mxu1  ;;  %v1850_v61 = vmul.f32 %v2851_v39, %v1785_v54  ;;  %v1908_v62 = vadd.f32 %v1849_v0, %v1848_v48 }
 0x286   :  { %v2263_v3 = vadd.f32 %v1544_v59, %v2828_v22  ;;  %v1546_v34 = vpop.f32.mrb[61].mxu0  ;;  %v2230_v43 = vpop.f32.mrb[93].mxu1 }
 0x287   :  { %v2264_v6 = vadd.f32 %v1546_v34, %v2837_v27  ;;  %v2231_v8 = vadd.f32 %v2230_v43, %v2229_v55  ;;  %v1548_v10 = vpop.f32.mrb[62].mxu0  ;;  %v2232_v11 = vpop.f32.mrb[94].mxu1  ;;  %v1909_v13 = vadd.f32 %v1908_v62, %v1850_v61  ;;  %v1853_v14 = vmul.f32 %v2851_v39, %v1788_v52 }
 0x288   :  { %v1789_v19 = vmax.f32 %v2263_v3, 0.0  ;;  %v2265_v20 = vadd.f32 %v1548_v10, %v2828_v22  ;;  %v1550_v5 = vpop.f32.mrb[63].mxu0  ;;  %v2233_v15 = vpop.f32.mrb[95].mxu1  ;;  %v1912_v26 = vadd.f32 %v1852_v33, %v1851_v57 }
 0x289   :  { %v1790_v46 = vmax.f32 %v2264_v6, 0.0  ;;  %v1741_v28 = vadd.f32 %v2231_v8, %v1644_v63  ;;  %v2266_v29 = vadd.f32 %v1550_v5, %v2837_v27  ;;  %v2234_v42 = vadd.f32 %v2233_v15, %v2232_v11  ;;  %1910 = vadd.xlane.f32.xlu0 %v1909_v13 }
 0x28a   :  { %v1854_v49 = vmul.f32 %v2841_v30, %v1789_v19  ;;  %v1792_v31 = vmax.f32 %v2265_v20, 0.0  ;;  %v1913_v35 = vadd.f32 %v1912_v26, %v1853_v14 }
 0x28b   :  { %v1855_v58 = vmul.f32 %v2846_v2, %v1790_v46  ;;  %v1791_v36 = vmax.f32 %v1741_v28, 0.0  ;;  %v1793_v21 = vmax.f32 %v2266_v29, 0.0  ;;  %v1744_v24 = vadd.f32 %v2234_v42, %v1647_v17 }
 0x28c   :  { %v1857_v22 = vmul.f32 %v2841_v30, %v1792_v31  ;;  %1914 = vadd.xlane.f32.xlu1 %v1913_v35 }
 0x28d   :  { %v1858_v37 = vmul.f32 %v2846_v2, %v1793_v21  ;;  %v1794_v7 = vmax.f32 %v1744_v24, 0.0  ;;  %v1856_v23 = vmul.f32 %v2851_v39, %v1791_v36  ;;  %v1916_v27 = vadd.f32 %v1855_v58, %v1854_v49 }
 0x28f   :  { %v1917_v25 = vadd.f32 %v1916_v27, %v1856_v23  ;;  %v1859_v4 = vmul.f32 %v2851_v39, %v1794_v7  ;;  %v1920_v40 = vadd.f32 %v1858_v37, %v1857_v22 }
 0x291   :  { %1918 = vadd.xlane.f32.xlu0 %v1917_v25  ;;  %v1921_v38 = vadd.f32 %v1920_v40, %v1859_v4 }
 0x293   :  { %1922 = vadd.xlane.f32.xlu1 %v1921_v38 }
 0x2e6   :  { %v1863_v18 = vpop.xlane.xlu0 %1862 }
 0x2e7   :  { %v1931_v60 = vadd.f32 %v2106_v16, %v1863_v18 }
 0x2e9   :  { %1948 = vst.msk [vmem:[%s3029_s7] sm:$0xff] %vm1947_vm0, %v1931_v60 }
 0x2ea   :  { %v1867_v30 = vpop.xlane.xlu0 %1866 }
 0x2eb   :  { %v1932_v2 = vadd.f32 %v2106_v16, %v1867_v30 }
 0x2ed   :  { %1949 = vst.msk [vmem:[%s3029_s7 + $0x8] sm:$0xff] %vm1947_vm0, %v1932_v2 }
 0x2ee   :  { %v1871_v39 = vpop.xlane.xlu1 %1870 }
 0x2ef   :  { %v1933_v1 = vadd.f32 %v2106_v16, %v1871_v39 }
 0x2f1   :  { %1950 = vst.msk [vmem:[%s3029_s7 + $0x10] sm:$0xff] %vm1947_vm0, %v1933_v1 }
 0x2f2   :  { %v1875_v41 = vpop.xlane.xlu1 %1874 }
 0x2f3   :  { %v1934_v9 = vadd.f32 %v2106_v16, %v1875_v41 }
 0x2f5   :  { %1951 = vst.msk [vmem:[%s3029_s7 + $0x18] sm:$0xff] %vm1947_vm0, %v1934_v9 }
 0x2f6   :  { %v1879_v47 = vpop.xlane.xlu0 %1878 }
 0x2f7   :  { %v1935_v44 = vadd.f32 %v2106_v16, %v1879_v47 }
 0x2f9   :  { %1952 = vst.msk [vmem:[%s3029_s7 + $0x20] sm:$0xff] %vm1947_vm0, %v1935_v44  ;;  %v1883_v45 = vpop.xlane.xlu1 %1882 }
 0x2fa   :  { %v1936_v32 = vadd.f32 %v2106_v16, %v1883_v45 }
 0x2fc   :  { %1953 = vst.msk [vmem:[%s3029_s7 + $0x28] sm:$0xff] %vm1947_vm0, %v1936_v32 }
 0x2fe   :  { %v1887_v51 = vpop.xlane.xlu0 %1886 }
 0x2ff   :  { %v1937_v48 = vadd.f32 %v2106_v16, %v1887_v51 }
 0x301   :  { %1954 = vst.msk [vmem:[%s3029_s7 + $0x30] sm:$0xff] %vm1947_vm0, %v1937_v48  ;;  %v1891_v50 = vpop.xlane.xlu1 %1890 }
 0x302   :  { %v1938_v53 = vadd.f32 %v2106_v16, %v1891_v50 }
 0x304   :  { %1955 = vst.msk [vmem:[%s3029_s7 + $0x38] sm:$0xff] %vm1947_vm0, %v1938_v53 }
 0x306   :  { %v1895_v0 = vpop.xlane.xlu0 %1894 }
 0x307   :  { %v1939_v54 = vadd.f32 %v2106_v16, %v1895_v0 }
 0x309   :  { %1956 = vst.msk [vmem:[%s3029_s7 + $0x40] sm:$0xff] %vm1947_vm0, %v1939_v54  ;;  %v1899_v12 = vpop.xlane.xlu1 %1898 }
 0x30a   :  { %v1940_v56 = vadd.f32 %v2106_v16, %v1899_v12 }
 0x30c   :  { %1957 = vst.msk [vmem:[%s3029_s7 + $0x48] sm:$0xff] %vm1947_vm0, %v1940_v56 }
 0x30e   :  { %v1903_v57 = vpop.xlane.xlu0 %1902 }
 0x30f   :  { %v1941_v33 = vadd.f32 %v2106_v16, %v1903_v57 }
 0x311   :  { %1958 = vst.msk [vmem:[%s3029_s7 + $0x50] sm:$0xff] %vm1947_vm0, %v1941_v33  ;;  %v1907_v52 = vpop.xlane.xlu1 %1906 }
 0x312   :  { %v1942_v59 = vadd.f32 %v2106_v16, %v1907_v52 }
 0x314   :  { %1959 = vst.msk [vmem:[%s3029_s7 + $0x58] sm:$0xff] %vm1947_vm0, %v1942_v59 }
 0x316   :  { %v1911_v55 = vpop.xlane.xlu0 %1910 }
 0x317   :  { %v1943_v61 = vadd.f32 %v2106_v16, %v1911_v55 }
 0x319   :  { %1960 = vst.msk [vmem:[%s3029_s7 + $0x60] sm:$0xff] %vm1947_vm0, %v1943_v61  ;;  %v1915_v62 = vpop.xlane.xlu1 %1914 }
 0x31a   :  { %v1944_v63 = vadd.f32 %v2106_v16, %v1915_v62 }
 0x31c   :  { %1961 = vst.msk [vmem:[%s3029_s7 + $0x68] sm:$0xff] %vm1947_vm0, %v1944_v63 }
 0x31e   :  { %v1919_v3 = vpop.xlane.xlu0 %1918 }
 0x31f   :  { %v1945_v34 = vadd.f32 %v2106_v16, %v1919_v3 }
 0x320   :  { %v1923_v43 = vpop.xlane.xlu1 %1922 }
 0x321   :  { %1962 = vst.msk [vmem:[%s3029_s7 + $0x70] sm:$0xff] %vm1947_vm0, %v1945_v34  ;;  %v1946_v6 = vadd.f32 %v2106_v16, %v1923_v43 }
 0x323   :  { %1963 = vst.msk [vmem:[%s3029_s7 + $0x78] sm:$0xff] %vm1947_vm0, %v1946_v6 }
 0x324   :  { %1968 = vsyncpa [#allocation4], 1 }
 0x325   :  { %1969 = vsyncpa [#allocation6], 1 }

</bundles_post_ra>
